<compile_context>
chip_gen: v6e
topology: v6e:2x2x1
jax: 0.10.0
libtpu: 0.0.40
codegen_flags: <defaults>
</compile_context>

<pallas_src>
import jax
import jax.numpy as jnp
from jax import lax
from jax.experimental import pallas as pl
from jax.experimental.pallas import tpu as pltpu


def _round_up(x, m):
    return ((x + m - 1) // m) * m


def _pack_rows(mats, pad_to, dtype):
    """Row-concatenate 2-D (rows, K) arrays, zero-padding each to a multiple of
    `pad_to` rows so in-kernel static slices stay tile-aligned (views, no
    copies). Returns (bank, [row_offset per mat])."""
    pieces, offs, cur = [], [], 0
    for m in mats:
        m = m.astype(dtype)
        r, k = m.shape
        rp = _round_up(r, pad_to)
        if rp > r:
            m = jnp.concatenate([m, jnp.zeros((rp - r, k), dtype)], axis=0)
        pieces.append(m)
        offs.append(cur)
        cur += rp
    return jnp.concatenate(pieces, axis=0), offs


# ----------------------------------------------------------------------------
# Kernel factory: one grid step == one batch element; the whole HFAN forward
# for that element runs fused in VMEM on a channels-first (C, HW) layout with
# both POC queries packed along the lane axis as (C, 2*HW).
# ----------------------------------------------------------------------------
def _make_hfan_kernel(C, IC, HW, oc, oi, ob):
    f32 = jnp.float32
    bf16 = jnp.bfloat16
    span_q1op = (oc["op"] - oc["q1"]) + _round_up(2, 16)
    span_kv = (oc["v"] - oc["k1"]) + _round_up(IC, 16)
    op_row = oc["op"] - oc["q1"]
    v_row = oc["v"] - oc["k1"]

    def kernel(im_ref, fw_ref, wc_ref, wi_ref, b_ref, out_ref):
        relu = lambda x: jnp.maximum(x, 0.0)

        def mmC(off, rows, x_b):      # weight bank with Cin == C
            return jnp.dot(wc_ref[off:off + rows, :], x_b,
                           preferred_element_type=f32)

        def mmI(off, rows, x_b):      # weight bank with Cin == IC
            return jnp.dot(wi_ref[off:off + rows, :], x_b,
                           preferred_element_type=f32)

        def bias(off, rows):          # (rows, 1) f32 column from the bias bank
            return b_ref[off:off + rows, :]

        im = im_ref[0]                                   # (C, HW) f32
        fw = fw_ref[0]
        im_b = im.astype(bf16)
        fw_b = fw.astype(bf16)
        # Both POC queries fused along the lane axis: (C, 2*HW) bf16.
        qf = jnp.concatenate([im_b, fw_b], axis=1)

        # ---- object_pred + POC query conv-1: one stacked matmul over qf ----
        r = mmC(oc["q1"], span_q1op, qf)                 # (span, 2HW) f32
        q1 = relu(r[:IC] + bias(ob["bq1"], IC)).astype(bf16)       # (IC, 2HW)
        im_pred = relu(r[op_row:op_row + 2, :HW] + bias(ob["bop"], 2))  # (2, HW)

        # ---- CSS (scale=1): softmax over spatial (lane) axis, then context ----
        m = jnp.max(im_pred, axis=1, keepdims=True)
        e = jnp.exp(im_pred - m)
        probs = e * pl.reciprocal(jnp.sum(e, axis=1, keepdims=True), approx=True)
        # ocr_context[c, j] = sum_s im[c, s] * probs[j, s]  (lane contraction,
        # bf16 operands, f32 accumulation).
        ctx = lax.dot_general(im_b, probs.astype(bf16),
                              (((1,), (1,)), ((), ())),
                              preferred_element_type=f32)          # (C, 2)
        ctx_b = ctx.astype(bf16)

        # ---- POC key / value projections of the (C, 2) object context ----
        rkv = mmC(oc["k1"], span_kv, ctx_b)                        # (span, 2)
        kk1 = relu(rkv[:IC] + bias(ob["bk1"], IC)).astype(bf16)
        vv = relu(rkv[v_row:v_row + IC] + bias(ob["bv"], IC))      # (IC, 2)
        # sim_scale (IC**-0.5) is folded into wk2/bk2 at trace time.
        kk = relu(mmI(oi["k2"], IC, kk1) + bias(ob["bk2"], IC)).astype(bf16)
        v0 = vv[:, 0:1]
        v1 = vv[:, 1:2]

        # ---- POC attention (both queries at once along the lane axis) ----
        q2 = relu(mmI(oi["q2"], IC, q1) + bias(ob["bq2"], IC)).astype(bf16)
        sim = lax.dot_general(kk, q2, (((0,), (0,)), ((), ())),
                              preferred_element_type=f32)          # (2, 2HW)
        sm = jnp.max(sim, axis=0, keepdims=True)
        se = jnp.exp(sim - sm)
        attn = se * pl.reciprocal(jnp.sum(se, axis=0, keepdims=True),
                                  approx=True)                     # (2, 2HW)
        # attn @ value with K == 2: two VPU rank-1 updates (keeps the
        # degenerate matmul off the MXU).
        context = v0 * attn[0:1, :] + v1 * attn[1:2, :]            # (IC, 2HW)
        context = relu(mmI(oi["o"], C, context.astype(bf16))
                       + bias(ob["bo"], C)).astype(bf16)           # (C, 2HW)
        # bottleneck(concat([context, query_feats], channel)) as two matmuls
        # (wb split into wb_ctx / wb_q at trace time).
        oc_all = relu(mmC(oc["bctx"], C, context) + mmC(oc["bq"], C, qf)
                      + bias(ob["bb"], C))                         # (C, 2HW)
        im_oc = oc_all[:, :HW]
        fw_oc = oc_all[:, HW:]
        foc = im_oc + fw_oc
        foc_b = foc.astype(bf16)

        # ---- channel-attention branch (ca_layers) ----
        x = relu(mmC(oc["c1"], IC, foc_b) + bias(ob["bc1"], IC))
        x = relu(x * bias(ob["sc1"], IC) + bias(ob["tc1"], IC))
        x = relu(mmI(oi["c2"], C, x.astype(bf16)) + bias(ob["bc2"], C))
        foc_ca = x * bias(ob["sc2"], C) + bias(ob["tc2"], C)       # (C, HW)

        # ---- pooled-attention branch (pa_layers): global average pool first ----
        gap = (jnp.sum(foc, axis=1, keepdims=True) * (1.0 / HW)).astype(bf16)
        y = relu(mmC(oc["p1"], IC, gap) + bias(ob["bp1"], IC))
        y = relu(y * bias(ob["sp1"], IC) + bias(ob["tp1"], IC))
        y = relu(mmI(oi["p2"], C, y.astype(bf16)) + bias(ob["bp2"], C))
        foc_pa = y * bias(ob["sp2"], C) + bias(ob["tp2"], C)       # (C, 1)

        w = jax.nn.sigmoid(foc_ca + foc_pa)
        # 2*im_oc*w + 2*fw_oc*(1-w) rewritten to save one (C, HW) multiply.
        out = 2.0 * (fw_oc + w * (im_oc - fw_oc))
        out_ref[0] = out.astype(out_ref.dtype)                     # lane-dense

    return kernel


# ----------------------------------------------------------------------------
# Wrapper: NCHW -> (B, C, HW) is a pure reshape (no HBM transposes, no extra
# dtype-convert pass); all parameters are packed into 3 banks at trace time.
# ----------------------------------------------------------------------------
def hfan_forward(im_nchw, fw_nchw, P, out_dtype=jnp.float32):
    # out_dtype=bf16 halves HBM writeback / output VMEM if downstream allows.
    B, C, H, W = im_nchw.shape
    HW = H * W
    IC = P["wq1"].shape[0]
    bf16 = jnp.bfloat16
    f32 = jnp.float32

    im = im_nchw.reshape(B, C, HW)      # f32 in; kernel casts to bf16 in VMEM
    fw = fw_nchw.reshape(B, C, HW)

    # Trace-time weight prep: split the bottleneck weight (assumes the
    # reference concat order cat([context, query_feats], dim=1)); fold the
    # attention-similarity scale into wk2/bk2 (exact: relu(s*x)=s*relu(x), s>0).
    wb = P["wb"]
    wb_ctx, wb_q = wb[:, :C], wb[:, C:]
    sim_scale = float(IC) ** -0.5
    wk2s = P["wk2"] * sim_scale
    bk2s = P["bk2"] * sim_scale

    # Weight bank with Cin == C (bf16, 16-row-aligned groups). wq1/wop and
    # wk1/wv are adjacent so each pair runs as a single stacked matmul.
    wc_bank, wc_off = _pack_rows(
        [P["wq1"], P["wop"], P["wk1"], P["wv"], wb_ctx, wb_q, P["wc1"], P["wp1"]],
        16, bf16)
    oc = dict(zip(["q1", "op", "k1", "v", "bctx", "bq", "c1", "p1"], wc_off))

    # Weight bank with Cin == IC.
    wi_bank, wi_off = _pack_rows([P["wq2"], wk2s, P["wo"], P["wc2"], P["wp2"]],
                                 16, bf16)
    oi = dict(zip(["q2", "k2", "o", "c2", "p2"], wi_off))

    # Bias / BN-affine bank: one (sum, 1) f32 array, 8-row-aligned groups.
    b_bank, b_off = _pack_rows(
        [P["bq1"], P["bop"], P["bk1"], P["bv"], P["bq2"], bk2s, P["bo"], P["bb"],
         P["bc1"], P["sc1"], P["tc1"], P["bc2"], P["sc2"], P["tc2"],
         P["bp1"], P["sp1"], P["tp1"], P["bp2"], P["sp2"], P["tp2"]],
        8, f32)
    ob = dict(zip(["bq1", "bop", "bk1", "bv", "bq2", "bk2", "bo", "bb",
                   "bc1", "sc1", "tc1", "bc2", "sc2", "tc2",
                   "bp1", "sp1", "tp1", "bp2", "sp2", "tp2"], b_off))

    kernel = _make_hfan_kernel(C, IC, HW, oc, oi, ob)

    feat_spec = pl.BlockSpec((1, C, HW), lambda b: (b, 0, 0))
    full = lambda a: pl.BlockSpec(a.shape, lambda b: (0, 0))

    # TODO(synk): for production shapes (e.g. C=256, HW=128*128) this fully
    # fused per-batch block exceeds v7x's 64 MiB VMEM; it needs an HW-tiled
    # multi-pass structure (pass 1: im_pred softmax stats + ctx/GAP
    # accumulation; pass 2: POC + CA/PA gating per tile) with bf16
    # intermediates/output, a raised vmem limit on v5e/v6e, and a second
    # "parallel" grid axis over HW tiles so both v7x TensorCores are busy
    # when B == 1. At these small shapes the fused per-batch block fits.
    out = pl.pallas_call(
        kernel,
        out_shape=jax.ShapeDtypeStruct((B, C, HW), out_dtype),
        grid_spec=pltpu.PrefetchScalarGridSpec(
            num_scalar_prefetch=0,
            grid=(B,),
            in_specs=[feat_spec, feat_spec,
                      full(wc_bank), full(wi_bank), full(b_bank)],
            out_specs=pl.BlockSpec((1, C, HW), lambda b: (b, 0, 0)),
        ),
        compiler_params=pltpu.CompilerParams(
            dimension_semantics=("parallel",),
            vmem_limit_bytes=32 * 1024 * 1024,
        ),
    )(im, fw, wc_bank, wi_bank, b_bank)
    return out.reshape(B, C, H, W)


# ----------------------------------------------------------------------------
# Deterministic synthetic parameters (shapes match HFAN.__init__).
# 1x1 conv weights are stored channels-first as (Cout, Cin); biases / BN
# affines as (Cout, 1).
# ----------------------------------------------------------------------------
_EPS = 1e-5


def _conv_bias(key, cin, cout):
    k1, k2 = jax.random.split(key)
    w = 0.1 * jax.random.normal(k1, (cout, cin), jnp.float32)
    b = 0.1 * jax.random.normal(k2, (cout,), jnp.float32)
    return w, b.reshape(cout, 1)


def _bn_affine(key, cout):
    k1, k2, k3, k4 = jax.random.split(key, 4)
    gamma = 1.0 + 0.1 * jax.random.normal(k1, (cout,), jnp.float32)
    beta = 0.1 * jax.random.normal(k2, (cout,), jnp.float32)
    mean = 0.1 * jax.random.normal(k3, (cout,), jnp.float32)
    var = jnp.abs(jax.random.normal(k4, (cout,), jnp.float32)) + 0.5
    s = gamma / jnp.sqrt(var + _EPS)
    t = beta - mean * s
    return s.reshape(cout, 1), t.reshape(cout, 1)


def _conv_bn_fold(key, cin, cout):
    k1, k2 = jax.random.split(key)
    w = 0.1 * jax.random.normal(k1, (cout, cin), jnp.float32)
    s, t = _bn_affine(k2, cout)
    return w * s, t  # bias-free conv followed by BN == conv(s*W) + t


def make_params(C, IC, key):
    ks = iter(jax.random.split(key, 20))
    P = {}
    # object_pred: ConvModule(C, 2, 1) -> conv + bias (+ default ReLU)
    P["wop"], P["bop"] = _conv_bias(next(ks), C, 2)
    # POC query_project: 2x ConvModule(conv no-bias + BN + ReLU)
    P["wq1"], P["bq1"] = _conv_bn_fold(next(ks), C, IC)
    P["wq2"], P["bq2"] = _conv_bn_fold(next(ks), IC, IC)
    # POC key_project
    P["wk1"], P["bk1"] = _conv_bn_fold(next(ks), C, IC)
    P["wk2"], P["bk2"] = _conv_bn_fold(next(ks), IC, IC)
    # POC value_project
    P["wv"], P["bv"] = _conv_bn_fold(next(ks), C, IC)
    # POC out_project
    P["wo"], P["bo"] = _conv_bn_fold(next(ks), IC, C)
    # POC bottleneck (2C -> C); split into (wb_ctx, wb_q) in the wrapper
    P["wb"], P["bb"] = _conv_bn_fold(next(ks), 2 * C, C)
    # ca_layers: conv+bias(+ReLU), BN, ReLU, conv+bias(+ReLU), BN
    P["wc1"], P["bc1"] = _conv_bias(next(ks), C, IC)
    P["sc1"], P["tc1"] = _bn_affine(next(ks), IC)
    P["wc2"], P["bc2"] = _conv_bias(next(ks), IC, C)
    P["sc2"], P["tc2"] = _bn_affine(next(ks), C)
    # pa_layers: (avgpool) conv+bias(+ReLU), BN, ReLU, conv+bias(+ReLU), BN
    P["wp1"], P["bp1"] = _conv_bias(next(ks), C, IC)
    P["sp1"], P["tp1"] = _bn_affine(next(ks), IC)
    P["wp2"], P["bp2"] = _conv_bias(next(ks), IC, C)
    P["sp2"], P["tp2"] = _bn_affine(next(ks), C)
    return P


if __name__ == "__main__":
    # TODO(synk): BatchNorm is implemented in eval/inference mode (running
    # stats folded into affine); training-mode batch statistics are not
    # reproduced inside the kernel.
    B, C, H, W = 2, 64, 16, 16
    r = 4
    IC = C // r

    key = jax.random.PRNGKey(0)
    k_im, k_fw, k_p = jax.random.split(key, 3)
    im = jax.random.normal(k_im, (B, C, H, W), jnp.float32)
    fw = jax.random.normal(k_fw, (B, C, H, W), jnp.float32)
    params = make_params(C, IC, k_p)

    out = hfan_forward(im, fw, params)
    out = jax.block_until_ready(out)
    assert out.shape == (B, C, H, W)
    assert out.dtype == jnp.float32
    assert bool(jnp.all(jnp.isfinite(out)))
    print("KERNEL_OK")
</pallas_src>

<mosaic_0001>
module attributes {stable_mosaic.version = 11 : i64} {
  func.func @kernel(%arg0: i32, %arg1: memref<1x64x256xf32, #tpu.memory_space<vmem>>, %arg2: memref<1x64x256xf32, #tpu.memory_space<vmem>>, %arg3: memref<224x64xbf16, #tpu.memory_space<vmem>>, %arg4: memref<224x16xbf16, #tpu.memory_space<vmem>>, %arg5: memref<696x1xf32, #tpu.memory_space<vmem>>, %arg6: memref<1x64x256xf32, #tpu.memory_space<vmem>>) attributes {dimension_semantics = [#tpu.dimension_semantics<parallel>], iteration_bounds = array<i64: 2>, scalar_prefetch = 0 : i64, scratch_operands = 0 : i64, tpu.core_type = #tpu.core_type<tc>, window_params = [{transform_indices = @transform_0, window_bounds = array<i64: 1, 64, 256>}, {transform_indices = @transform_1, window_bounds = array<i64: 1, 64, 256>}, {pipeline_mode = #tpu.pipeline_mode<synchronous>, transform_indices = @transform_2, window_bounds = array<i64: 224, 64>}, {pipeline_mode = #tpu.pipeline_mode<synchronous>, transform_indices = @transform_3, window_bounds = array<i64: 224, 16>}, {pipeline_mode = #tpu.pipeline_mode<synchronous>, transform_indices = @transform_4, window_bounds = array<i64: 696, 1>}, {transform_indices = @transform_5, window_bounds = array<i64: 1, 64, 256>}]} {
    %c0 = arith.constant 0 : index
    %c0_0 = arith.constant 0 : index
    %c0_1 = arith.constant 0 : index
    %0 = vector.load %arg1[%c0, %c0_0, %c0_1] : memref<1x64x256xf32, #tpu.memory_space<vmem>>, vector<1x64x256xf32>
    %1 = vector.shape_cast %0 : vector<1x64x256xf32> to vector<64x256xf32>
    %c0_2 = arith.constant 0 : index
    %c0_3 = arith.constant 0 : index
    %c0_4 = arith.constant 0 : index
    %2 = vector.load %arg2[%c0_2, %c0_3, %c0_4] : memref<1x64x256xf32, #tpu.memory_space<vmem>>, vector<1x64x256xf32>
    %3 = vector.shape_cast %2 : vector<1x64x256xf32> to vector<64x256xf32>
    %4 = arith.truncf %1 : vector<64x256xf32> to vector<64x256xbf16>
    %5 = arith.truncf %3 : vector<64x256xf32> to vector<64x256xbf16>
    %6 = tpu.concatenate %4, %5 in 1 : vector<64x256xbf16>, vector<64x256xbf16> -> vector<64x512xbf16>
    %c0_5 = arith.constant 0 : index
    %c0_6 = arith.constant 0 : index
    %7 = vector.load %arg3[%c0_5, %c0_6] : memref<224x64xbf16, #tpu.memory_space<vmem>>, vector<32x64xbf16>
    %cst = arith.constant dense<0.000000e+00> : vector<32x512xf32>
    %8 = tpu.matmul %7, %6, %cst {dimension_numbers = #tpu.dot_dimension_numbers<[1], [0], [0], [1], [0, 0, 1, 1], [], []>} : vector<32x64xbf16>, vector<64x512xbf16>, vector<32x512xf32> -> vector<32x512xf32>
    %9 = vector.extract_strided_slice %8 {offsets = [0, 0], sizes = [16, 512], strides = [1, 1]} : vector<32x512xf32> to vector<16x512xf32>
    %c0_7 = arith.constant 0 : index
    %c0_8 = arith.constant 0 : index
    %10 = vector.load %arg5[%c0_7, %c0_8] : memref<696x1xf32, #tpu.memory_space<vmem>>, vector<16x1xf32>
    %11 = vector.broadcast %10 : vector<16x1xf32> to vector<16x512xf32>
    %12 = arith.addf %9, %11 : vector<16x512xf32>
    %cst_9 = arith.constant 0.000000e+00 : f32
    %13 = vector.broadcast %cst_9 : f32 to vector<16x512xf32>
    %14 = arith.maximumf %12, %13 : vector<16x512xf32>
    %15 = arith.truncf %14 : vector<16x512xf32> to vector<16x512xbf16>
    %16 = vector.extract_strided_slice %8 {offsets = [16, 0], sizes = [2, 256], strides = [1, 1]} : vector<32x512xf32> to vector<2x256xf32>
    %c16 = arith.constant 16 : index
    %c0_10 = arith.constant 0 : index
    %17 = vector.load %arg5[%c16, %c0_10] : memref<696x1xf32, #tpu.memory_space<vmem>>, vector<2x1xf32>
    %18 = vector.broadcast %17 : vector<2x1xf32> to vector<2x256xf32>
    %19 = arith.addf %16, %18 : vector<2x256xf32>
    %cst_11 = arith.constant 0.000000e+00 : f32
    %20 = vector.broadcast %cst_11 : f32 to vector<2x256xf32>
    %21 = arith.maximumf %19, %20 : vector<2x256xf32>
    %cst_12 = arith.constant dense<0xFF800000> : vector<2xf32>
    %22 = vector.multi_reduction <maximumf>, %21, %cst_12 [1] : vector<2x256xf32> to vector<2xf32>
    %23 = vector.shape_cast %22 : vector<2xf32> to vector<2x1xf32>
    %24 = vector.broadcast %23 : vector<2x1xf32> to vector<2x256xf32>
    %25 = arith.subf %21, %24 : vector<2x256xf32>
    %26 = math.exp %25 : vector<2x256xf32>
    %cst_13 = arith.constant dense<0.000000e+00> : vector<2xf32>
    %27 = vector.multi_reduction <add>, %26, %cst_13 [1] : vector<2x256xf32> to vector<2xf32>
    %28 = vector.shape_cast %27 : vector<2xf32> to vector<2x1xf32>
    %29 = tpu.reciprocal %28 {approx = true} : vector<2x1xf32> -> vector<2x1xf32>
    %30 = vector.broadcast %29 : vector<2x1xf32> to vector<2x256xf32>
    %31 = arith.mulf %26, %30 : vector<2x256xf32>
    %32 = arith.truncf %31 : vector<2x256xf32> to vector<2x256xbf16>
    %cst_14 = arith.constant dense<0.000000e+00> : vector<64x2xf32>
    %33 = tpu.matmul %4, %32, %cst_14 {dimension_numbers = #tpu.dot_dimension_numbers<[1], [1], [0], [0], [0, 0, 1, 0], [], []>} : vector<64x256xbf16>, vector<2x256xbf16>, vector<64x2xf32> -> vector<64x2xf32>
    %34 = arith.truncf %33 : vector<64x2xf32> to vector<64x2xbf16>
    %c32 = arith.constant 32 : index
    %c0_15 = arith.constant 0 : index
    %35 = vector.load %arg3[%c32, %c0_15] : memref<224x64xbf16, #tpu.memory_space<vmem>>, vector<32x64xbf16>
    %cst_16 = arith.constant dense<0.000000e+00> : vector<32x2xf32>
    %36 = tpu.matmul %35, %34, %cst_16 {dimension_numbers = #tpu.dot_dimension_numbers<[1], [0], [0], [1], [0, 0, 1, 1], [], []>} : vector<32x64xbf16>, vector<64x2xbf16>, vector<32x2xf32> -> vector<32x2xf32>
    %37 = vector.extract_strided_slice %36 {offsets = [0, 0], sizes = [16, 2], strides = [1, 1]} : vector<32x2xf32> to vector<16x2xf32>
    %c24 = arith.constant 24 : index
    %c0_17 = arith.constant 0 : index
    %38 = vector.load %arg5[%c24, %c0_17] : memref<696x1xf32, #tpu.memory_space<vmem>>, vector<16x1xf32>
    %39 = vector.broadcast %38 : vector<16x1xf32> to vector<16x2xf32>
    %40 = arith.addf %37, %39 : vector<16x2xf32>
    %cst_18 = arith.constant 0.000000e+00 : f32
    %41 = vector.broadcast %cst_18 : f32 to vector<16x2xf32>
    %42 = arith.maximumf %40, %41 : vector<16x2xf32>
    %43 = arith.truncf %42 : vector<16x2xf32> to vector<16x2xbf16>
    %44 = vector.extract_strided_slice %36 {offsets = [16, 0], sizes = [16, 2], strides = [1, 1]} : vector<32x2xf32> to vector<16x2xf32>
    %c40 = arith.constant 40 : index
    %c0_19 = arith.constant 0 : index
    %45 = vector.load %arg5[%c40, %c0_19] : memref<696x1xf32, #tpu.memory_space<vmem>>, vector<16x1xf32>
    %46 = vector.broadcast %45 : vector<16x1xf32> to vector<16x2xf32>
    %47 = arith.addf %44, %46 : vector<16x2xf32>
    %cst_20 = arith.constant 0.000000e+00 : f32
    %48 = vector.broadcast %cst_20 : f32 to vector<16x2xf32>
    %49 = arith.maximumf %47, %48 : vector<16x2xf32>
    %c16_21 = arith.constant 16 : index
    %c0_22 = arith.constant 0 : index
    %50 = vector.load %arg4[%c16_21, %c0_22] : memref<224x16xbf16, #tpu.memory_space<vmem>>, vector<16x16xbf16>
    %cst_23 = arith.constant dense<0.000000e+00> : vector<16x2xf32>
    %51 = tpu.matmul %50, %43, %cst_23 {dimension_numbers = #tpu.dot_dimension_numbers<[1], [0], [0], [1], [0, 0, 1, 1], [], []>} : vector<16x16xbf16>, vector<16x2xbf16>, vector<16x2xf32> -> vector<16x2xf32>
    %c72 = arith.constant 72 : index
    %c0_24 = arith.constant 0 : index
    %52 = vector.load %arg5[%c72, %c0_24] : memref<696x1xf32, #tpu.memory_space<vmem>>, vector<16x1xf32>
    %53 = vector.broadcast %52 : vector<16x1xf32> to vector<16x2xf32>
    %54 = arith.addf %51, %53 : vector<16x2xf32>
    %cst_25 = arith.constant 0.000000e+00 : f32
    %55 = vector.broadcast %cst_25 : f32 to vector<16x2xf32>
    %56 = arith.maximumf %54, %55 : vector<16x2xf32>
    %57 = arith.truncf %56 : vector<16x2xf32> to vector<16x2xbf16>
    %58 = vector.extract_strided_slice %49 {offsets = [0, 0], sizes = [16, 1], strides = [1, 1]} : vector<16x2xf32> to vector<16x1xf32>
    %59 = vector.extract_strided_slice %49 {offsets = [0, 1], sizes = [16, 1], strides = [1, 1]} : vector<16x2xf32> to vector<16x1xf32>
    %c0_26 = arith.constant 0 : index
    %c0_27 = arith.constant 0 : index
    %60 = vector.load %arg4[%c0_26, %c0_27] : memref<224x16xbf16, #tpu.memory_space<vmem>>, vector<16x16xbf16>
    %cst_28 = arith.constant dense<0.000000e+00> : vector<16x512xf32>
    %61 = tpu.matmul %60, %15, %cst_28 {dimension_numbers = #tpu.dot_dimension_numbers<[1], [0], [0], [1], [0, 0, 1, 1], [], []>} : vector<16x16xbf16>, vector<16x512xbf16>, vector<16x512xf32> -> vector<16x512xf32>
    %c56 = arith.constant 56 : index
    %c0_29 = arith.constant 0 : index
    %62 = vector.load %arg5[%c56, %c0_29] : memref<696x1xf32, #tpu.memory_space<vmem>>, vector<16x1xf32>
    %63 = vector.broadcast %62 : vector<16x1xf32> to vector<16x512xf32>
    %64 = arith.addf %61, %63 : vector<16x512xf32>
    %cst_30 = arith.constant 0.000000e+00 : f32
    %65 = vector.broadcast %cst_30 : f32 to vector<16x512xf32>
    %66 = arith.maximumf %64, %65 : vector<16x512xf32>
    %67 = arith.truncf %66 : vector<16x512xf32> to vector<16x512xbf16>
    %cst_31 = arith.constant dense<0.000000e+00> : vector<2x512xf32>
    %68 = tpu.matmul %57, %67, %cst_31 {dimension_numbers = #tpu.dot_dimension_numbers<[0], [0], [1], [1], [0, 1, 1, 1], [], []>} : vector<16x2xbf16>, vector<16x512xbf16>, vector<2x512xf32> -> vector<2x512xf32>
    %cst_32 = arith.constant dense<0xFF800000> : vector<512xf32>
    %69 = vector.multi_reduction <maximumf>, %68, %cst_32 [0] : vector<2x512xf32> to vector<512xf32>
    %70 = vector.shape_cast %69 : vector<512xf32> to vector<1x512xf32>
    %71 = vector.broadcast %70 : vector<1x512xf32> to vector<2x512xf32>
    %72 = arith.subf %68, %71 : vector<2x512xf32>
    %73 = math.exp %72 : vector<2x512xf32>
    %cst_33 = arith.constant dense<0.000000e+00> : vector<512xf32>
    %74 = vector.multi_reduction <add>, %73, %cst_33 [0] : vector<2x512xf32> to vector<512xf32>
    %75 = vector.shape_cast %74 : vector<512xf32> to vector<1x512xf32>
    %76 = tpu.reciprocal %75 {approx = true} : vector<1x512xf32> -> vector<1x512xf32>
    %77 = vector.broadcast %76 : vector<1x512xf32> to vector<2x512xf32>
    %78 = arith.mulf %73, %77 : vector<2x512xf32>
    %79 = vector.extract_strided_slice %78 {offsets = [0, 0], sizes = [1, 512], strides = [1, 1]} : vector<2x512xf32> to vector<1x512xf32>
    %80 = vector.broadcast %58 : vector<16x1xf32> to vector<16x512xf32>
    %81 = vector.broadcast %79 : vector<1x512xf32> to vector<16x512xf32>
    %82 = arith.mulf %80, %81 : vector<16x512xf32>
    %83 = vector.extract_strided_slice %78 {offsets = [1, 0], sizes = [1, 512], strides = [1, 1]} : vector<2x512xf32> to vector<1x512xf32>
    %84 = vector.broadcast %59 : vector<16x1xf32> to vector<16x512xf32>
    %85 = vector.broadcast %83 : vector<1x512xf32> to vector<16x512xf32>
    %86 = arith.mulf %84, %85 : vector<16x512xf32>
    %87 = arith.addf %82, %86 : vector<16x512xf32>
    %88 = arith.truncf %87 : vector<16x512xf32> to vector<16x512xbf16>
    %c32_34 = arith.constant 32 : index
    %c0_35 = arith.constant 0 : index
    %89 = vector.load %arg4[%c32_34, %c0_35] : memref<224x16xbf16, #tpu.memory_space<vmem>>, vector<64x16xbf16>
    %cst_36 = arith.constant dense<0.000000e+00> : vector<64x512xf32>
    %90 = tpu.matmul %89, %88, %cst_36 {dimension_numbers = #tpu.dot_dimension_numbers<[1], [0], [0], [1], [0, 0, 1, 1], [], []>} : vector<64x16xbf16>, vector<16x512xbf16>, vector<64x512xf32> -> vector<64x512xf32>
    %c88 = arith.constant 88 : index
    %c0_37 = arith.constant 0 : index
    %91 = vector.load %arg5[%c88, %c0_37] : memref<696x1xf32, #tpu.memory_space<vmem>>, vector<64x1xf32>
    %92 = vector.broadcast %91 : vector<64x1xf32> to vector<64x512xf32>
    %93 = arith.addf %90, %92 : vector<64x512xf32>
    %cst_38 = arith.constant 0.000000e+00 : f32
    %94 = vector.broadcast %cst_38 : f32 to vector<64x512xf32>
    %95 = arith.maximumf %93, %94 : vector<64x512xf32>
    %96 = arith.truncf %95 : vector<64x512xf32> to vector<64x512xbf16>
    %c64 = arith.constant 64 : index
    %c0_39 = arith.constant 0 : index
    %97 = vector.load %arg3[%c64, %c0_39] : memref<224x64xbf16, #tpu.memory_space<vmem>>, vector<64x64xbf16>
    %cst_40 = arith.constant dense<0.000000e+00> : vector<64x512xf32>
    %98 = tpu.matmul %97, %96, %cst_40 {dimension_numbers = #tpu.dot_dimension_numbers<[1], [0], [0], [1], [0, 0, 1, 1], [], []>} : vector<64x64xbf16>, vector<64x512xbf16>, vector<64x512xf32> -> vector<64x512xf32>
    %c128 = arith.constant 128 : index
    %c0_41 = arith.constant 0 : index
    %99 = vector.load %arg3[%c128, %c0_41] : memref<224x64xbf16, #tpu.memory_space<vmem>>, vector<64x64xbf16>
    %cst_42 = arith.constant dense<0.000000e+00> : vector<64x512xf32>
    %100 = tpu.matmul %99, %6, %cst_42 {dimension_numbers = #tpu.dot_dimension_numbers<[1], [0], [0], [1], [0, 0, 1, 1], [], []>} : vector<64x64xbf16>, vector<64x512xbf16>, vector<64x512xf32> -> vector<64x512xf32>
    %101 = arith.addf %98, %100 : vector<64x512xf32>
    %c152 = arith.constant 152 : index
    %c0_43 = arith.constant 0 : index
    %102 = vector.load %arg5[%c152, %c0_43] : memref<696x1xf32, #tpu.memory_space<vmem>>, vector<64x1xf32>
    %103 = vector.broadcast %102 : vector<64x1xf32> to vector<64x512xf32>
    %104 = arith.addf %101, %103 : vector<64x512xf32>
    %cst_44 = arith.constant 0.000000e+00 : f32
    %105 = vector.broadcast %cst_44 : f32 to vector<64x512xf32>
    %106 = arith.maximumf %104, %105 : vector<64x512xf32>
    %107 = vector.extract_strided_slice %106 {offsets = [0, 0], sizes = [64, 256], strides = [1, 1]} : vector<64x512xf32> to vector<64x256xf32>
    %108 = vector.extract_strided_slice %106 {offsets = [0, 256], sizes = [64, 256], strides = [1, 1]} : vector<64x512xf32> to vector<64x256xf32>
    %109 = arith.addf %107, %108 : vector<64x256xf32>
    %110 = arith.truncf %109 : vector<64x256xf32> to vector<64x256xbf16>
    %c192 = arith.constant 192 : index
    %c0_45 = arith.constant 0 : index
    %111 = vector.load %arg3[%c192, %c0_45] : memref<224x64xbf16, #tpu.memory_space<vmem>>, vector<16x64xbf16>
    %cst_46 = arith.constant dense<0.000000e+00> : vector<16x256xf32>
    %112 = tpu.matmul %111, %110, %cst_46 {dimension_numbers = #tpu.dot_dimension_numbers<[1], [0], [0], [1], [0, 0, 1, 1], [], []>} : vector<16x64xbf16>, vector<64x256xbf16>, vector<16x256xf32> -> vector<16x256xf32>
    %c216 = arith.constant 216 : index
    %c0_47 = arith.constant 0 : index
    %113 = vector.load %arg5[%c216, %c0_47] : memref<696x1xf32, #tpu.memory_space<vmem>>, vector<16x1xf32>
    %114 = vector.broadcast %113 : vector<16x1xf32> to vector<16x256xf32>
    %115 = arith.addf %112, %114 : vector<16x256xf32>
    %cst_48 = arith.constant 0.000000e+00 : f32
    %116 = vector.broadcast %cst_48 : f32 to vector<16x256xf32>
    %117 = arith.maximumf %115, %116 : vector<16x256xf32>
    %c232 = arith.constant 232 : index
    %c0_49 = arith.constant 0 : index
    %118 = vector.load %arg5[%c232, %c0_49] : memref<696x1xf32, #tpu.memory_space<vmem>>, vector<16x1xf32>
    %119 = vector.broadcast %118 : vector<16x1xf32> to vector<16x256xf32>
    %120 = arith.mulf %117, %119 : vector<16x256xf32>
    %c248 = arith.constant 248 : index
    %c0_50 = arith.constant 0 : index
    %121 = vector.load %arg5[%c248, %c0_50] : memref<696x1xf32, #tpu.memory_space<vmem>>, vector<16x1xf32>
    %122 = vector.broadcast %121 : vector<16x1xf32> to vector<16x256xf32>
    %123 = arith.addf %120, %122 : vector<16x256xf32>
    %cst_51 = arith.constant 0.000000e+00 : f32
    %124 = vector.broadcast %cst_51 : f32 to vector<16x256xf32>
    %125 = arith.maximumf %123, %124 : vector<16x256xf32>
    %126 = arith.truncf %125 : vector<16x256xf32> to vector<16x256xbf16>
    %c96 = arith.constant 96 : index
    %c0_52 = arith.constant 0 : index
    %127 = vector.load %arg4[%c96, %c0_52] : memref<224x16xbf16, #tpu.memory_space<vmem>>, vector<64x16xbf16>
    %cst_53 = arith.constant dense<0.000000e+00> : vector<64x256xf32>
    %128 = tpu.matmul %127, %126, %cst_53 {dimension_numbers = #tpu.dot_dimension_numbers<[1], [0], [0], [1], [0, 0, 1, 1], [], []>} : vector<64x16xbf16>, vector<16x256xbf16>, vector<64x256xf32> -> vector<64x256xf32>
    %c264 = arith.constant 264 : index
    %c0_54 = arith.constant 0 : index
    %129 = vector.load %arg5[%c264, %c0_54] : memref<696x1xf32, #tpu.memory_space<vmem>>, vector<64x1xf32>
    %130 = vector.broadcast %129 : vector<64x1xf32> to vector<64x256xf32>
    %131 = arith.addf %128, %130 : vector<64x256xf32>
    %cst_55 = arith.constant 0.000000e+00 : f32
    %132 = vector.broadcast %cst_55 : f32 to vector<64x256xf32>
    %133 = arith.maximumf %131, %132 : vector<64x256xf32>
    %c328 = arith.constant 328 : index
    %c0_56 = arith.constant 0 : index
    %134 = vector.load %arg5[%c328, %c0_56] : memref<696x1xf32, #tpu.memory_space<vmem>>, vector<64x1xf32>
    %135 = vector.broadcast %134 : vector<64x1xf32> to vector<64x256xf32>
    %136 = arith.mulf %133, %135 : vector<64x256xf32>
    %c392 = arith.constant 392 : index
    %c0_57 = arith.constant 0 : index
    %137 = vector.load %arg5[%c392, %c0_57] : memref<696x1xf32, #tpu.memory_space<vmem>>, vector<64x1xf32>
    %138 = vector.broadcast %137 : vector<64x1xf32> to vector<64x256xf32>
    %139 = arith.addf %136, %138 : vector<64x256xf32>
    %cst_58 = arith.constant dense<0.000000e+00> : vector<64xf32>
    %140 = vector.multi_reduction <add>, %109, %cst_58 [1] : vector<64x256xf32> to vector<64xf32>
    %141 = vector.shape_cast %140 : vector<64xf32> to vector<64x1xf32>
    %cst_59 = arith.constant 3.906250e-03 : f32
    %142 = vector.broadcast %cst_59 : f32 to vector<64x1xf32>
    %143 = arith.mulf %141, %142 : vector<64x1xf32>
    %144 = arith.truncf %143 : vector<64x1xf32> to vector<64x1xbf16>
    %c208 = arith.constant 208 : index
    %c0_60 = arith.constant 0 : index
    %145 = vector.load %arg3[%c208, %c0_60] : memref<224x64xbf16, #tpu.memory_space<vmem>>, vector<16x64xbf16>
    %cst_61 = arith.constant dense<0.000000e+00> : vector<16x1xf32>
    %146 = tpu.matmul %145, %144, %cst_61 {dimension_numbers = #tpu.dot_dimension_numbers<[1], [0], [0], [1], [0, 0, 1, 1], [], []>} : vector<16x64xbf16>, vector<64x1xbf16>, vector<16x1xf32> -> vector<16x1xf32>
    %c456 = arith.constant 456 : index
    %c0_62 = arith.constant 0 : index
    %147 = vector.load %arg5[%c456, %c0_62] : memref<696x1xf32, #tpu.memory_space<vmem>>, vector<16x1xf32>
    %148 = arith.addf %146, %147 : vector<16x1xf32>
    %cst_63 = arith.constant 0.000000e+00 : f32
    %149 = vector.broadcast %cst_63 : f32 to vector<16x1xf32>
    %150 = arith.maximumf %148, %149 : vector<16x1xf32>
    %c472 = arith.constant 472 : index
    %c0_64 = arith.constant 0 : index
    %151 = vector.load %arg5[%c472, %c0_64] : memref<696x1xf32, #tpu.memory_space<vmem>>, vector<16x1xf32>
    %152 = arith.mulf %150, %151 : vector<16x1xf32>
    %c488 = arith.constant 488 : index
    %c0_65 = arith.constant 0 : index
    %153 = vector.load %arg5[%c488, %c0_65] : memref<696x1xf32, #tpu.memory_space<vmem>>, vector<16x1xf32>
    %154 = arith.addf %152, %153 : vector<16x1xf32>
    %cst_66 = arith.constant 0.000000e+00 : f32
    %155 = vector.broadcast %cst_66 : f32 to vector<16x1xf32>
    %156 = arith.maximumf %154, %155 : vector<16x1xf32>
    %157 = arith.truncf %156 : vector<16x1xf32> to vector<16x1xbf16>
    %c160 = arith.constant 160 : index
    %c0_67 = arith.constant 0 : index
    %158 = vector.load %arg4[%c160, %c0_67] : memref<224x16xbf16, #tpu.memory_space<vmem>>, vector<64x16xbf16>
    %cst_68 = arith.constant dense<0.000000e+00> : vector<64x1xf32>
    %159 = tpu.matmul %158, %157, %cst_68 {dimension_numbers = #tpu.dot_dimension_numbers<[1], [0], [0], [1], [0, 0, 1, 1], [], []>} : vector<64x16xbf16>, vector<16x1xbf16>, vector<64x1xf32> -> vector<64x1xf32>
    %c504 = arith.constant 504 : index
    %c0_69 = arith.constant 0 : index
    %160 = vector.load %arg5[%c504, %c0_69] : memref<696x1xf32, #tpu.memory_space<vmem>>, vector<64x1xf32>
    %161 = arith.addf %159, %160 : vector<64x1xf32>
    %cst_70 = arith.constant 0.000000e+00 : f32
    %162 = vector.broadcast %cst_70 : f32 to vector<64x1xf32>
    %163 = arith.maximumf %161, %162 : vector<64x1xf32>
    %c568 = arith.constant 568 : index
    %c0_71 = arith.constant 0 : index
    %164 = vector.load %arg5[%c568, %c0_71] : memref<696x1xf32, #tpu.memory_space<vmem>>, vector<64x1xf32>
    %165 = arith.mulf %163, %164 : vector<64x1xf32>
    %c632 = arith.constant 632 : index
    %c0_72 = arith.constant 0 : index
    %166 = vector.load %arg5[%c632, %c0_72] : memref<696x1xf32, #tpu.memory_space<vmem>>, vector<64x1xf32>
    %167 = arith.addf %165, %166 : vector<64x1xf32>
    %168 = vector.broadcast %167 : vector<64x1xf32> to vector<64x256xf32>
    %169 = arith.addf %139, %168 : vector<64x256xf32>
    %170 = arith.negf %169 : vector<64x256xf32>
    %171 = math.exp %170 : vector<64x256xf32>
    %cst_73 = arith.constant 1.000000e+00 : f32
    %172 = vector.broadcast %cst_73 : f32 to vector<64x256xf32>
    %173 = arith.addf %172, %171 : vector<64x256xf32>
    %174 = arith.divf %172, %173 : vector<64x256xf32>
    %175 = arith.subf %107, %108 : vector<64x256xf32>
    %176 = arith.mulf %174, %175 : vector<64x256xf32>
    %177 = arith.addf %108, %176 : vector<64x256xf32>
    %cst_74 = arith.constant 2.000000e+00 : f32
    %178 = vector.broadcast %cst_74 : f32 to vector<64x256xf32>
    %179 = arith.mulf %178, %177 : vector<64x256xf32>
    %c0_75 = arith.constant 0 : index
    %c0_76 = arith.constant 0 : index
    %c0_77 = arith.constant 0 : index
    %180 = vector.load %arg6[%c0_75, %c0_76, %c0_77] : memref<1x64x256xf32, #tpu.memory_space<vmem>>, vector<1x64x256xf32>
    %181 = vector.shape_cast %180 : vector<1x64x256xf32> to vector<64x256xf32>
    %182 = vector.shape_cast %179 : vector<64x256xf32> to vector<1x64x256xf32>
    tpu.vector_store %arg6[%c0_75, %c0_76, %c0_77], %182 {strides = array<i32>} : memref<1x64x256xf32, #tpu.memory_space<vmem>>, vector<1x64x256xf32>,
    return
  }
  func.func @transform_0(%arg0: i32) -> (i32, i32, i32) {
    %c0_i32 = arith.constant 0 : i32
    %c0_i32_0 = arith.constant 0 : i32
    %c0_i32_1 = arith.constant 0 : i32
    return %arg0, %c0_i32, %c0_i32_0 : i32, i32, i32
  }
  func.func @transform_1(%arg0: i32) -> (i32, i32, i32) {
    %c0_i32 = arith.constant 0 : i32
    %c0_i32_0 = arith.constant 0 : i32
    %c0_i32_1 = arith.constant 0 : i32
    return %arg0, %c0_i32, %c0_i32_0 : i32, i32, i32
  }
  func.func @transform_2(%arg0: i32) -> (i32, i32) {
    %c0_i32 = arith.constant 0 : i32
    %c0_i32_0 = arith.constant 0 : i32
    %c0_i32_1 = arith.constant 0 : i32
    return %c0_i32, %c0_i32_0 : i32, i32
  }
  func.func @transform_3(%arg0: i32) -> (i32, i32) {
    %c0_i32 = arith.constant 0 : i32
    %c0_i32_0 = arith.constant 0 : i32
    %c0_i32_1 = arith.constant 0 : i32
    return %c0_i32, %c0_i32_0 : i32, i32
  }
  func.func @transform_4(%arg0: i32) -> (i32, i32) {
    %c0_i32 = arith.constant 0 : i32
    %c0_i32_0 = arith.constant 0 : i32
    %c0_i32_1 = arith.constant 0 : i32
    return %c0_i32, %c0_i32_0 : i32, i32
  }
  func.func @transform_5(%arg0: i32) -> (i32, i32, i32) {
    %c0_i32 = arith.constant 0 : i32
    %c0_i32_0 = arith.constant 0 : i32
    %c0_i32_1 = arith.constant 0 : i32
    return %arg0, %c0_i32, %c0_i32_0 : i32, i32, i32
  }
}

</mosaic_0001>

<bundles_post_ra>
// kernel: tpu_custom_call.1
= control target key start
LH: loop header
LB: loop body
LE: loop exit
PB: predicated region body
PF: predicated region fallthrough
CT: control target
= control target key end

     0   :  { %10 = vsyncpa [#allocation3], 0  ;;  %s4398_s0 = inlined_call_operand.vmem [shape: f32[2,64,256], index: 0, kind: input, shape index: {}]   ;;  %s4399_s1 = inlined_call_operand.vmem [shape: f32[2,64,256], index: 1, kind: input, shape index: {}]   ;;  %s4400_s2 = inlined_call_operand.vmem [shape: bf16[224,64], index: 2, kind: input, shape index: {}]   ;;  %s4401_s3 = inlined_call_operand.vmem [shape: bf16[224,16], index: 3, kind: input, shape index: {}]   ;;  %s4402_s4 = inlined_call_operand.vmem [shape: f32[696,1], index: 4, kind: input, shape index: {}]   ;;  %s4403_s5 = inlined_call_operand.hbm [shape: f32[2,64,256], index: 5, kind: output, shape index: {}]  }
   0x1   :  { %12 = vsyncpa [#allocation3 + $0x1], 0  ;;  %s3295_s18 = smov 0   ;;  %s3297_s19 = smov 0  }
   0x2   :  { %s3299_s20 = smov 0   ;;  %s3301_s21 = smov 0  }
   0x3 LB: > { %s3316_s22 = sadd.s32 4294967295, %s3256_s21   ;;  %s2867_s23 = sadd.s32 4294967294, %s3256_s21   ;;  %s3256_s21 = sphi %s3301_s21, %s4516_s21   ;;  %s3252_s20 = sphi %s3299_s20, %s4515_s20   ;;  %s3248_s19 = sphi %s3297_s19, %s4514_s19   ;;  %s3244_s18 = sphi %s3295_s18, %s4513_s18  }
   0x4   : > { %s3320_s24 = sadd.s32 1, %s3256_s21   ;;  %s140_s25 = sadd.s32 1, %s3252_s20 }
   0x5   : > { %s137_s26 = ssub.s32 %s3256_s21, %s3320_s24  ;;  %p150_p0 = scmp.ne.s32.totalorder %s3252_s20, %s3248_s19 }
   0x6   : > { %p138_p1 = scmp.eq.s32.totalorder %s137_s26, 0  ;;  %p151_p2 = scmp.eq.s32.totalorder %s3316_s22, 1 }
   0x7   : > { %p156_p3 = scmp.ne.s32.totalorder %s3248_s19, %s3244_s18  ;;  %p157_p4 = scmp.eq.s32.totalorder %s2867_s23, 1 }
   0x8   : > { %s3331_s27 = scalar_select %p138_p1, %s3252_s20, %s140_s25  }
   0x9   : > { %p3333_p5 = por %p151_p2, %p150_p0  ;;  %p3337_p6 = por %p157_p4, %p156_p3 }
   0xa   : > { %p2870_p7 = scmp.ge.s32.totalorder %s3256_s21, 1  ;;  %p200_p8 = scmp.lt.s32.totalorder %s3256_s21, 3 }
   0xc   : > { %p201_p9 = pnand %p2870_p7, %p200_p8 }
   0xe   : > { %204 = sbr.rel (%p201_p9) target bundleno = 2853 (0xb25), region = 40 }
  0x13   : > { %p233_p10 = scmp.lt.s32.totalorder %s3316_s22, 1  ;;  %v4404_v0 = vmov 0   ;;  %v445_v1 = vld [vmem:[%s4402_s4 + $0x10] sm:$0x3]  ;;  %vm306_vm0 = vcmask 523264   ;;  %v3386_v26 = vld [vmem:[%s4400_s2] sm:$0xff]  }
  0x14   : > { %345 = vmatprep.mubr.bf16.mxu0 %v4404_v0  ;;  %3076 = vset.pattern.permute.xlu0 %v4404_v0  ;;  %v3395_v27 = vld [vmem:[%s4400_s2 + $0x8] sm:$0xff]   ;;  %vm455_vm1 = vcmask 1041408   ;;  %v651_v44 = vld [vmem:[%s4402_s4 + $0x50] sm:$0xff]  ;;  %v615_v57 = vld [vmem:[%s4402_s4 + $0x18] sm:$0xff]  ;;  %vm3260_vm2 = vmmov 0   ;;  %vm667_vm3 = vcmask 130048  }
  0x15   : > { %s3347_s30 = scalar_select %p233_p10, %s3316_s22, 1  ;;  %3077 = vset.pattern.permute.xlu1 %v4404_v0  ;;  %396 = vmatprep.mubr.bf16.mxu1 %v4404_v0  ;;  %v632_v45 = vld [vmem:[%s4402_s4 + $0x28] sm:$0xff]  ;;  %v633_v46 = vld [vmem:[%s4402_s4 + $0x30] sm:$0xff]  ;;  %v616_v58 = vld [vmem:[%s4402_s4 + $0x20] sm:$0xff] }
  0x16   : > { %448 = vperm.xlu0 %3076, %v445_v1   ;;  %v413_v59 = vld [vmem:[%s4402_s4] sm:$0xff]  ;;  %v414_v60 = vld [vmem:[%s4402_s4 + $0x8] sm:$0xff]  ;;  %s230_s25 = sand.u32 1, %s3248_s19   ;;  %s2972_s7 = sshll.u32 %s3316_s22, 11 }
  0x17   : > { %s2970_s8 = sshll.u32 %s3347_s30, 7  ;;  %s2871_s26 = sshll.u32 %s230_s25, 7 }
  0x18   : > { %s237_s11 = scalar_lea.vmem %s4398_s0, %s2970_s8  ;;  %s242_s23 = scalar_lea.vmem %s4399_s1, %s2970_s8 }
  0x19   : > { %v257_v2 = vld [vmem:[%s237_s11 + $0x68] sm:$0xff]  ;;  %v259_v3 = vld [vmem:[%s237_s11 + $0x78] sm:$0xff]  ;;  %v256_v4 = vld [vmem:[%s237_s11 + $0x60] sm:$0xff]  ;;  %s4288_s6 = scalar_lea.vmem [#allocation2], %s2871_s26  ;;  %s4350_s12 = scalar_lea.hbm %s4403_s5, %s2972_s7 }
  0x1a   : > { %v3360_v5 = vpack.c.bf16 %v259_v3, %v257_v2  ;;  %v258_v6 = vld [vmem:[%s237_s11 + $0x70] sm:$0xff]  ;;  %v253_v7 = vld [vmem:[%s237_s11 + $0x48] sm:$0xff]  ;;  %v255_v8 = vld [vmem:[%s237_s11 + $0x58] sm:$0xff]  ;;  %s2793_s9 = sshll.u32 %s4288_s6, 4  ;;  %s4358_s22 = scalar_lea.sflag [#allocation3], %s230_s25  ;;  %s4352_s9 = int_to_ptr.vmem [resolvable:$true] %s2793_s9 }
  0x1b   : > { %v3362_v9 = vpack.c.bf16 %v258_v6, %v256_v4  ;;  %v3364_v10 = vpack.c.bf16 %v255_v8, %v253_v7  ;;  %v252_v11 = vld [vmem:[%s237_s11 + $0x40] sm:$0xff]  ;;  %v254_v12 = vld [vmem:[%s237_s11 + $0x50] sm:$0xff]  ;;  %v249_v13 = vld [vmem:[%s237_s11 + $0x28] sm:$0xff]  ;;  %s3196_s13 = scalar_lea.vmem %s4352_s9, 2048  ;;  %s3262_s14 = smov [#allocation2]  }
  0x1c   : > { %321 = vmatprep.subr.bf16.mxu0 %v3360_v5  ;;  %v251_v14 = vld [vmem:[%s237_s11 + $0x38] sm:$0xff]  ;;  %v3368_v15 = vpack.c.bf16 %v254_v12, %v252_v11  ;;  %v248_v16 = vld [vmem:[%s237_s11 + $0x20] sm:$0xff]  ;;  %v250_v17 = vld [vmem:[%s237_s11 + $0x30] sm:$0xff]  ;;  %p3197_p11 = scmp.ne.s32.totalorder %s4352_s9, %s3196_s13  ;;  %s3200_s15 = sshll.u32 %s3262_s14, 4  ;;  %s3201_s15 = int_to_ptr.vmem [resolvable:$false] %s3200_s15 }
  0x1d   : > { %322 = vmatpush1.bf16.msra.mxu0 %v3362_v9  ;;  %v245_v18 = vld [vmem:[%s237_s11 + $0x8] sm:$0xff]  ;;  %v3371_v19 = vpack.c.bf16 %v251_v14, %v249_v13  ;;  %v247_v20 = vld [vmem:[%s237_s11 + $0x18] sm:$0xff]  ;;  %v244_v21 = vld [vmem:[%s237_s11] sm:$0xff]  ;;  %v3374_v23 = vpack.c.bf16 %v250_v17, %v248_v16  ;;  %s3202_s16 = scalar_lea.vmem %s3201_s15, 4096  ;;  %p3203_p0 = scmp.lt.s32.totalorder %s4352_s9, %s3201_s15 }
  0x1e   : > { %323 = vmatprep.subr.bf16.mxu0 %v3364_v10  ;;  %v246_v22 = vld [vmem:[%s237_s11 + $0x10] sm:$0xff]  ;;  %v3377_v24 = vpack.c.bf16 %v247_v20, %v245_v18  ;;  %v273_v4 = vld [vmem:[%s242_s23 + $0x68] sm:$0xff]  ;;  %v275_v6 = vld [vmem:[%s242_s23 + $0x78] sm:$0xff]  ;;  %p3198_p12 = pnand %p3197_p11, %p3333_p5  ;;  %p3204_p1 = scmp.lt.s32.totalorder %s3202_s16, %s3196_s13 }
  0x1f   : > { %v3380_v25 = vpack.c.bf16 %v246_v22, %v244_v21  ;;  %v3446_v7 = vpack.c.bf16 %v275_v6, %v273_v4  ;;  %v272_v8 = vld [vmem:[%s242_s23 + $0x60] sm:$0xff]  ;;  %v274_v11 = vld [vmem:[%s242_s23 + $0x70] sm:$0xff]  ;;  %v269_v13 = vld [vmem:[%s242_s23 + $0x48] sm:$0xff] }
  0x20   : > { %v3448_v12 = vpack.c.bf16 %v274_v11, %v272_v8  ;;  %v271_v14 = vld [vmem:[%s242_s23 + $0x58] sm:$0xff]  ;;  %v268_v17 = vld [vmem:[%s242_s23 + $0x40] sm:$0xff]  ;;  %v270_v18 = vld [vmem:[%s242_s23 + $0x50] sm:$0xff]  ;;  %p3199_p13 = pneg %p3198_p12  ;;  %p3205_p2 = por %p3204_p1, %p3203_p0 }
  0x21   : > { %324 = vmatpush1.bf16.msra.mxu0 %v3368_v15  ;;  %372 = vmatprep.subr.bf16.mxu1 %v3446_v7  ;;  %v3452_v16 = vpack.c.bf16 %v271_v14, %v269_v13  ;;  %v3454_v20 = vpack.c.bf16 %v270_v18, %v268_v17  ;;  %v265_v21 = vld [vmem:[%s242_s23 + $0x28] sm:$0xff]  ;;  %v267_v22 = vld [vmem:[%s242_s23 + $0x38] sm:$0xff] }
  0x22   : > { %325 = vmatprep.subr.bf16.mxu0 %v3371_v19  ;;  %373 = vmatpush1.bf16.msra.mxu1 %v3448_v12  ;;  %p3206_p3 = pnand %p3205_p2, %p3199_p13 }
  0x23   : > { %374 = vmatprep.subr.bf16.mxu1 %v3452_v16 }
  0x25   : > { %326 = vmatpush1.bf16.msra.mxu0 %v3374_v23 }
  0x26   : > { %327 = vmatprep.subr.bf16.mxu0 %v3377_v24  ;;  %375 = vmatpush1.bf16.msra.mxu1 %v3454_v20 }
  0x29   : > { %328 = vmatpush1.bf16.msra.mxu0 %v3380_v25 }
  0x2c   : > { %2878 = vmatmul.mubr.msk.bf16.vlgmr.msra.gmra.mxu0 %vm306_vm0, %v3386_v26 }
  0x2d   : > { %355 = vmatprep.mubr.bf16.mxu0 %v4404_v0 }
  0x34   : > { %2879 = vmatmul.mubr.msk.bf16.gmra.mxu0 %vm306_vm0, %v3395_v27 }
  0x35   : > { %509 = vmatprep.mubr.bf16.mxu0 %v3377_v24 }
  0x91   : > { %v449_v32 = vpop.permute.xlu0 %448 }
  0xec   : > { %v3400_v28 = vpop.f32.mrf.mxu0 }
  0xee   : > { %v3402_v29 = vpop.f32.mrf.mxu0 }
  0xf0   : > { %v3404_v30 = vpop.f32.mrf.mxu0 }
  0xf2   : > { %v3406_v31 = vpop.f32.mrf.mxu0 }
  0xf4   : > { %v357_v33 = vpop.f32.mrf.mxu0 }
  0xf5   : > { %v451_v34 = vadd.f32 %v449_v32, %v357_v33  ;;  %v264_v33 = vld [vmem:[%s242_s23 + $0x20] sm:$0xff] }
  0xf6   : > { %v359_v35 = vpop.f32.mrf.mxu0 }
  0xf7   : > { %v453_v36 = vmax.f32 %v451_v34, 0.0  ;;  %v452_v37 = vadd.f32 %v449_v32, %v359_v35  ;;  %v3458_v32 = vpack.c.bf16 %v267_v22, %v265_v21  ;;  %v266_v34 = vld [vmem:[%s242_s23 + $0x30] sm:$0xff] }
  0xf8   : > { %v361_v38 = vpop.f32.mrf.mxu0  ;;  %v3460_v35 = vpack.c.bf16 %v266_v34, %v264_v33 }
  0xf9   : > { %v454_v39 = vmax.f32 %v452_v37, 0.0  ;;  %v456_v41 = vsel %vm455_vm1, %v453_v36, -inf  ;;  %376 = vmatprep.subr.bf16.mxu1 %v3458_v32  ;;  %v263_v37 = vld [vmem:[%s242_s23 + $0x18] sm:$0xff] }
  0xfa   : > { %v362_v40 = vpop.f32.mrf.mxu0  ;;  %377 = vmatpush1.bf16.msra.mxu1 %v3460_v35 }
  0xfb   : > { %v457_v42 = vsel %vm455_vm1, %v454_v39, -inf  ;;  %v262_v40 = vld [vmem:[%s242_s23 + $0x10] sm:$0xff] }
  0xfc   : > { %v458_v43 = vmax.f32 %v456_v41, %v457_v42  ;;  %v3084_v42 = vld [vmem:[%s4400_s2 + $0x10] sm:$0xff]  }
  0xfe   : > { %459 = vmax.xlane.f32.xlu0 %v458_v43  ;;  %v650_v43 = vld [vmem:[%s4402_s4 + $0x48] sm:$0xff] }
 0x114   : > { %659 = vperm.xlu0 %3076, %v651_v44  }
 0x118   : > { %636 = vperm.xlu0 %3076, %v632_v45  }
 0x11c   : > { %641 = vperm.xlu0 %3076, %v633_v46  }
 0x187   : > { %v460_v47 = vpop.xlane.xlu0 %459 }
 0x188   : > { %v461_v48 = vsub.f32 %v453_v36, %v460_v47  ;;  %v462_v49 = vsub.f32 %v454_v39, %v460_v47  ;;  %v261_v36 = vld [vmem:[%s242_s23 + $0x8] sm:$0xff]  ;;  %v260_v39 = vld [vmem:[%s242_s23] sm:$0xff] }
 0x189   : > { %v3464_v38 = vpack.c.bf16 %v263_v37, %v261_v36  ;;  %v3466_v41 = vpack.c.bf16 %v262_v40, %v260_v39 }
 0x18a   : > { %v463_v50 = vmul.f32 1.442695, %v461_v48  ;;  %v465_v51 = vmul.f32 1.442695, %v462_v49 }
 0x18b   : > { %378 = vmatprep.subr.bf16.mxu1 %v3464_v38 }
 0x18c   : > { %3110 = vpow2.f32 %v463_v50  ;;  %379 = vmatpush1.bf16.msra.mxu1 %v3466_v41 }
 0x18d   : > { %3112 = vpow2.f32 %v465_v51 }
 0x18f   : > { %2880 = vmatmul.mubr.msk.bf16.vlgmr.msra.gmra.mxu1 %vm306_vm0, %v3386_v26  ;;  %v717_v26 = vld [vmem:[%s4402_s4 + $0x38] sm:$0xff] }
 0x190   : > { %406 = vmatprep.mubr.bf16.mxu1 %v4404_v0 }
 0x197   : > { %2881 = vmatmul.mubr.msk.bf16.gmra.mxu1 %vm306_vm0, %v3395_v27  ;;  %v718_v27 = vld [vmem:[%s4402_s4 + $0x40] sm:$0xff] }
 0x198   : > { %2999 = vmatprep.mubr.msk.bf16.mxu1 %vm306_vm0, %v3084_v42 }
 0x199   : > { %v3111_v52 = vpop.eup %3110 }
 0x19a   : > { %v3113_v53 = vpop.eup %3112  ;;  %v467_v54 = vsel %vm455_vm1, %v3111_v52, 0.0 }
 0x19b   : > { %v468_v55 = vsel %vm455_vm1, %v3113_v53, 0.0 }
 0x19c   : > { %v469_v56 = vadd.f32 %v468_v55, %v467_v54 }
 0x19e   : > { %470 = vadd.xlane.f32.xlu1 %v469_v56 }
 0x1af   : > { %619 = vperm.xlu1 %3077, %v615_v57  }
 0x1b3   : > { %624 = vperm.xlu1 %3077, %v616_v58  }
 0x1b7   : > { %417 = vperm.xlu1 %3077, %v413_v59  }
 0x1bb   : > { %422 = vperm.xlu1 %3077, %v414_v60  }
 0x1bf   : > { %654 = vperm.xlu1 %3077, %v650_v43  }
 0x1c3   : > { %721 = vperm.xlu1 %3077, %v717_v26  }
 0x1c7   : > { %726 = vperm.xlu1 %3077, %v718_v27  }
 0x227   : > { %v471_v61 = vpop.xlane.xlu1 %470 }
 0x228   : > { %3114 = vrcp.f32 %v471_v61 }
 0x235   : > { %v3115_v62 = vpop.eup %3114 }
 0x236   : > { %v474_v63 = vmul.f32 %v3115_v62, %v3113_v53  ;;  %v473_v1 = vmul.f32 %v3115_v62, %v3111_v52 }
 0x238   : > { %v476_v2 = vpack.c.bf16 %v474_v63, %v474_v63  ;;  %v475_v3 = vpack.c.bf16 %v473_v1, %v473_v1  ;;  %v3085_v1 = vld [vmem:[%s4400_s2 + $0x18] sm:$0xff]  }
 0x23a   : > { %491 = vmatprep.subr.bf16.mxu0 %v476_v2  ;;  %v620_v2 = vpop.permute.xlu1 %619 }
 0x23b   : > { %492 = vmatpush1.bf16.xpose.msra.mxu0 %v475_v3 }
 0x23e   : > { %v625_v3 = vpop.permute.xlu1 %624 }
 0x242   : > { %510 = vmatmul.mubr.bf16.vlgmr.msra.gmra.mxu0 %v3380_v25  ;;  %v418_v4 = vpop.permute.xlu1 %417 }
 0x243   : > { %517 = vmatprep.mubr.bf16.mxu0 %v3371_v19 }
 0x246   : > { %v423_v14 = vpop.permute.xlu1 %422 }
 0x24a   : > { %518 = vmatmul.mubr.bf16.gmra.mxu0 %v3374_v23 }
 0x24b   : > { %525 = vmatprep.mubr.bf16.mxu0 %v3364_v10 }
 0x24f   : > { %v398_v6 = vpop.f32.mrf.mxu1 }
 0x250   : > { %v427_v8 = vadd.f32 %v418_v4, %v398_v6 }
 0x251   : > { %v400_v11 = vpop.f32.mrf.mxu1 }
 0x252   : > { %526 = vmatmul.mubr.bf16.gmra.mxu0 %v3368_v15  ;;  %v428_v13 = vadd.f32 %v418_v4, %v400_v11  ;;  %v435_v18 = vmax.f32 %v427_v8, 0.0 }
 0x253   : > { %533 = vmatprep.mubr.bf16.mxu0 %v3360_v5  ;;  %v402_v17 = vpop.f32.mrf.mxu1 }
 0x254   : > { %v431_v21 = vadd.f32 %v423_v14, %v402_v17  ;;  %v436_v33 = vmax.f32 %v428_v13, 0.0  ;;  %v3261_v13 = vmov 1  }
 0x255   : > { %v404_v22 = vpop.f32.mrf.mxu1 }
 0x256   : > { %v439_v34 = vmax.f32 %v431_v21, 0.0  ;;  %v432_v36 = vadd.f32 %v423_v14, %v404_v22 }
 0x257   : > { %v408_v37 = vpop.f32.mrf.mxu1 }
 0x258   : > { %v443_v39 = vpack.c.bf16 %v439_v34, %v435_v18  ;;  %v440_v40 = vmax.f32 %v432_v36, 0.0 }
 0x259   : > { %v409_v42 = vpop.f32.mrf.mxu1 }
 0x25a   : > { %534 = vmatmul.mubr.bf16.gmra.mxu0 %v3362_v9  ;;  %v444_v43 = vpack.c.bf16 %v440_v40, %v436_v33 }
 0x25b   : > { %886 = vmatprep.mubr.bf16.mxu0 %v4404_v0  ;;  %v410_v26 = vpop.f32.mrf.mxu1 }
 0x25d   : > { %v411_v27 = vpop.f32.mrf.mxu1 }
 0x302   : > { %v511_v44 = vpop.f32.mrf.mxu0 }
 0x304   : > { %v513_v45 = vpop.f32.mrf.mxu0 }
 0x305   : > { %v660_v45 = vpop.permute.xlu0 %659 }
 0x306   : > { %v514_v46 = vpop.f32.mrf.mxu0 }
 0x307   : > { %v542_v63 = vpack.c.bf16 %v514_v46, %v511_v44  ;;  %v4406_v44 = vmov 0.0  }
 0x308   : > { %v516_v47 = vpop.f32.mrf.mxu0 }
 0x309   : > { %v637_v46 = vpop.permute.xlu0 %636 }
 0x30a   : > { %v519_v48 = vpop.f32.mrf.mxu0 }
 0x30c   : > { %v521_v49 = vpop.f32.mrf.mxu0 }
 0x30e   : > { %v522_v50 = vpop.f32.mrf.mxu0 }
 0x30f   : > { %v543_v62 = vpack.c.bf16 %v522_v50, %v519_v48 }
 0x310   : > { %v524_v51 = vpop.f32.mrf.mxu0 }
 0x311   : > { %v642_v51 = vpop.permute.xlu0 %641 }
 0x312   : > { %v527_v52 = vpop.f32.mrf.mxu0 }
 0x314   : > { %v529_v53 = vpop.f32.mrf.mxu0 }
 0x316   : > { %v530_v54 = vpop.f32.mrf.mxu0 }
 0x317   : > { %v544_v61 = vpack.c.bf16 %v530_v54, %v527_v52  ;;  %v430_v52 = vadd.f32 %v423_v14, %v3406_v31 }
 0x318   : > { %v532_v55 = vpop.f32.mrf.mxu0 }
 0x31a   : > { %v535_v56 = vpop.f32.mrf.mxu0 }
 0x31c   : > { %v537_v57 = vpop.f32.mrf.mxu0 }
 0x31e   : > { %v538_v58 = vpop.f32.mrf.mxu0 }
 0x31f   : > { %v545_v59 = vpack.c.bf16 %v538_v58, %v535_v56  ;;  %v426_v56 = vadd.f32 %v418_v4, %v3402_v29  ;;  %v429_v58 = vadd.f32 %v423_v14, %v3404_v30 }
 0x320   : > { %v540_v60 = vpop.f32.mrf.mxu0 }
 0x321   : > { %2991 = vmatprep.subr.bf16.mxu1 %v545_v59  ;;  %v434_v6 = vmax.f32 %v426_v56, 0.0  ;;  %v437_v8 = vmax.f32 %v429_v58, 0.0 }
 0x322   : > { %2992 = vmatpush3.bf16.msra.mxu1 %v545_v59 }
 0x323   : > { %2993 = vmatprep.subr.bf16.mxu1 %v544_v61 }
 0x326   : > { %2994 = vmatpush3.bf16.msra.mxu1 %v544_v61  ;;  %v438_v61 = vmax.f32 %v430_v52, 0.0 }
 0x327   : > { %2995 = vmatprep.subr.bf16.mxu1 %v543_v62 }
 0x328   : > { %v442_v11 = vpack.c.bf16 %v438_v61, %v434_v6 }
 0x32a   : > { %2996 = vmatpush3.bf16.msra.mxu1 %v543_v62  ;;  %v425_v62 = vadd.f32 %v418_v4, %v3400_v28  ;;  %v3087_v28 = vld [vmem:[%s4401_s3] sm:$0xff]  }
 0x32b   : > { %2997 = vmatprep.subr.bf16.mxu1 %v542_v63 }
 0x32c   : > { %v433_v29 = vmax.f32 %v425_v62, 0.0 }
 0x32e   : > { %2998 = vmatpush3.bf16.msra.mxu1 %v542_v63  ;;  %v441_v30 = vpack.c.bf16 %v437_v8, %v433_v29  ;;  %v1104_v29 = vld [vmem:[%s4402_s4 + $0x88] sm:$0xff] }
 0x32f   : > { %3003 = vmatprep.subr.bf16.mxu1 %v4406_v44 }
 0x331   : > { %3000 = vmatmul.mubr.msk.bf16.vlgmr.msra.gmra.mxu1 %vm306_vm0, %v3085_v1 }
 0x332   : > { %3005 = vmatprep.mubr.msk.bf16.mxu1 %vm3260_vm2, %v4406_v44 }
 0x3f1   : > { %v3001_v47 = vpop.f32.mrf.mxu1 }
 0x3f2   : > { %v644_v48 = vadd.f32 %v3001_v47, %v637_v46 }
 0x3f3   : > { %v600_v49 = vpop.f32.mrf.mxu1 }
 0x3f4   : > { %v646_v50 = vmax.f32 %v644_v48, 0.0  ;;  %v627_v54 = vadd.f32 %v620_v2, %v600_v49  ;;  %v3086_v2 = vld [vmem:[%s4401_s3 + $0x8] sm:$0xff]  }
 0x3f5   : > { %v3002_v53 = vpop.f32.mrf.mxu1 }
 0x3f6   : > { %v645_v55 = vadd.f32 %v3002_v53, %v642_v51  ;;  %1014 = vperm.xlu0 %3076, %v646_v50   ;;  %v629_v63 = vmax.f32 %v627_v54, 0.0 }
 0x3f7   : > { %v603_v57 = vpop.f32.mrf.mxu1 }
 0x3f8   : > { %v647_v59 = vmax.f32 %v645_v55, 0.0  ;;  %v628_v60 = vadd.f32 %v625_v3, %v603_v57  ;;  %v655_v3 = vpop.permute.xlu1 %654 }
 0x3fa   : > { %v630_v1 = vmax.f32 %v628_v60, 0.0  ;;  %1019 = vperm.xlu0 %3076, %v647_v59  }
 0x3fc   : > { %v631_v31 = vpack.c.bf16 %v630_v1, %v629_v63  ;;  %v722_v22 = vpop.permute.xlu1 %721 }
 0x3fe   : > { %3078 = vset.pattern.permute.xlu0 %v3261_v13  ;;  %3004 = vmatpush3.bf16.msra.mxu1 %v631_v31 }
 0x3ff   : > { %1047 = vperm.xlu0 %3078, %v646_v50   ;;  %751 = vmatprep.subr.bf16.mxu1 %v442_v11 }
 0x401   : > { %3006 = vmatmul.mubr.msk.bf16.vlgmr.msra.gmra.mxu1 %vm667_vm3, %v3086_v2  ;;  %v1105_v2 = vld [vmem:[%s4402_s4 + $0x90] sm:$0xff] }
 0x402   : > { %752 = vmatpush1.bf16.msra.mxu1 %v441_v30  ;;  %769 = vmatprep.mubr.bf16.mxu1 %v4404_v0  ;;  %v1103_v30 = vld [vmem:[%s4402_s4 + $0x80] sm:$0xff] }
 0x403   : > { %794 = vmatprep.subr.bf16.mxu1 %v444_v43  ;;  %3080 = vset.pattern.permute.xlu0 %v4404_v0 }
 0x404   : > { %1138 = vperm.xlu0 %3080, %v1104_v29  }
 0x408   : > { %1133 = vperm.xlu0 %3080, %v1103_v30  }
 0x409   : > { %2889 = vmatmul.mubr.msk.bf16.vlgmr.msra.gmra.mxu1 %vm667_vm3, %v3087_v28 }
 0x40a   : > { %795 = vmatpush1.bf16.msra.mxu1 %v443_v39  ;;  %812 = vmatprep.mubr.bf16.mxu1 %v4404_v0  ;;  %v727_v39 = vpop.permute.xlu1 %726 }
 0x411   : > { %2890 = vmatmul.mubr.msk.bf16.vlgmr.msra.gmra.mxu1 %vm667_vm3, %v3087_v28  ;;  %v1100_v28 = vld [vmem:[%s4402_s4 + $0x68] sm:$0xff] }
 0x412   : > { %927 = vmatprep.mubr.bf16.mxu1 %v4404_v0 }
 0x4c1   : > { %v705_v4 = vpop.f32.mrf.mxu1 }
 0x4c2   : > { %v706_v17 = vadd.f32 %v705_v4, %v655_v3  ;;  %v1101_v3 = vld [vmem:[%s4402_s4 + $0x70] sm:$0xff]  ;;  %v1098_v4 = vld [vmem:[%s4402_s4 + $0x58] sm:$0xff] }
 0x4c3   : > { %v3007_v14 = vpop.f32.mrf.mxu1  ;;  %1123 = vperm.xlu0 %3080, %v1101_v3  }
 0x4c4   : > { %v712_v34 = vmax.f32 %v706_v17, 0.0  ;;  %v1099_v14 = vld [vmem:[%s4402_s4 + $0x60] sm:$0xff]  ;;  %v1751_v17 = vld [vmem:[%s4402_s4 + $0xd0] sm:$0xff] }
 0x4c5   : > { %v708_v18 = vpop.f32.mrf.mxu1 }
 0x4c6   : > { %v709_v21 = vadd.f32 %v708_v18, %v660_v45  ;;  %v1750_v18 = vld [vmem:[%s4402_s4 + $0xc8] sm:$0xff] }
 0x4c7   : > { %v3008_v33 = vpop.f32.mrf.mxu1  ;;  %1113 = vperm.xlu0 %3080, %v1099_v14  }
 0x4c8   : > { %v713_v36 = vmax.f32 %v709_v21, 0.0  ;;  %v1749_v21 = vld [vmem:[%s4402_s4 + $0xc0] sm:$0xff]  ;;  %v1747_v33 = vld [vmem:[%s4402_s4 + $0xb0] sm:$0xff] }
 0x4c9   : > { %v771_v37 = vpop.f32.mrf.mxu1 }
 0x4ca   : > { %v714_v40 = vpack.c.bf16 %v713_v36, %v712_v34  ;;  %v772_v46 = vadd.f32 %v771_v37, %v722_v22  ;;  %v1746_v34 = vld [vmem:[%s4402_s4 + $0xa8] sm:$0xff] }
 0x4cb   : > { %v773_v42 = vpop.f32.mrf.mxu1  ;;  %1789 = vperm.xlu0 %3080, %v1751_v17  }
 0x4cc   : > { %835 = vxpose.xlu1.c.b16.start.end [1/1] (short) (narrow) %v714_v40, 16  ;;  %v774_v26 = vadd.f32 %v773_v42, %v722_v22  ;;  %v823_v52 = vmax.f32 %v772_v46, 0.0  ;;  %v1745_v40 = vld [vmem:[%s4402_s4 + $0xa0] sm:$0xff]  ;;  %v1744_v42 = vld [vmem:[%s4402_s4 + $0x98] sm:$0xff] }
 0x4cd   : > { %v775_v43 = vpop.f32.mrf.mxu1 }
 0x4ce   : > { %v776_v27 = vadd.f32 %v775_v43, %v727_v39  ;;  %v824_v45 = vmax.f32 %v774_v26, 0.0 }
 0x4cf   : > { %v777_v47 = vpop.f32.mrf.mxu1  ;;  %1779 = vperm.xlu0 %3080, %v1749_v21  }
 0x4d0   : > { %v778_v48 = vadd.f32 %v777_v47, %v727_v39  ;;  %3079 = vset.pattern.permute.xlu1 %v3261_v13  ;;  %v827_v49 = vmax.f32 %v776_v27, 0.0  ;;  %v1102_v13 = vld [vmem:[%s4402_s4 + $0x78] sm:$0xff] }
 0x4d1   : > { %1051 = vperm.xlu1 %3079, %v647_v59   ;;  %v814_v50 = vpop.f32.mrf.mxu1 }
 0x4d2   : > { %v828_v51 = vmax.f32 %v778_v48, 0.0  ;;  %v831_v55 = vpack.c.bf16 %v827_v49, %v823_v52  ;;  %v815_v60 = vadd.f32 %v814_v50, %v722_v22 }
 0x4d3   : > { %v816_v53 = vpop.f32.mrf.mxu1  ;;  %1769 = vperm.xlu0 %3080, %v1747_v33  }
 0x4d4   : > { %v832_v54 = vpack.c.bf16 %v828_v51, %v824_v45  ;;  %v817_v57 = vadd.f32 %v816_v53, %v722_v22  ;;  %v825_v6 = vmax.f32 %v815_v60, 0.0  ;;  %v1748_v22 = vld [vmem:[%s4402_s4 + $0xb8] sm:$0xff] }
 0x4d5   : > { %v818_v56 = vpop.f32.mrf.mxu1  ;;  %3081 = vset.pattern.permute.xlu1 %v4404_v0 }
 0x4d6   : > { %v819_v58 = vadd.f32 %v818_v56, %v727_v39  ;;  %868 = vmatprep.subr.bf16.mxu0 %v832_v54  ;;  %v826_v1 = vmax.f32 %v817_v57, 0.0  ;;  %1143 = vperm.xlu1 %3081, %v1105_v2  }
 0x4d7   : > { %v820_v61 = vpop.f32.mrf.mxu1  ;;  %869 = vmatpush1.bf16.msra.mxu0 %v831_v55  ;;  %1759 = vperm.xlu0 %3080, %v1745_v40  }
 0x4d8   : > { %v821_v62 = vadd.f32 %v820_v61, %v727_v39  ;;  %v829_v63 = vmax.f32 %v819_v58, 0.0 }
 0x4da   : > { %v830_v59 = vmax.f32 %v821_v62, 0.0  ;;  %v833_v31 = vpack.c.bf16 %v829_v63, %v825_v6  ;;  %1128 = vperm.xlu1 %3081, %v1102_v13  }
 0x4dc   : > { %v834_v8 = vpack.c.bf16 %v830_v59, %v826_v1 }
 0x4de   : > { %909 = vmatprep.subr.bf16.mxu1 %v834_v8  ;;  %1118 = vperm.xlu1 %3081, %v1100_v28  }
 0x4df   : > { %910 = vmatpush1.bf16.msra.mxu1 %v833_v31 }
 0x4e2   : > { %1108 = vperm.xlu1 %3081, %v1098_v4  }
 0x4e6   : > { %1784 = vperm.xlu1 %3081, %v1750_v18  }
 0x4ea   : > { %1774 = vperm.xlu1 %3081, %v1748_v22  }
 0x4ee   : > { %1764 = vperm.xlu1 %3081, %v1746_v34  }
 0x4f2   : > { %1754 = vperm.xlu1 %3081, %v1744_v42  }
 0x52e   : > { %v843_v11 = vpop.trf.xlu1 }
 0x52f   : > { %2891 = vmatmul.mubr.msk.bf16.vlgmr.msra.gmra.mxu0 %vm667_vm3, %v843_v11  ;;  %2892 = vmatmul.mubr.msk.bf16.vlgmr.msra.gmra.mxu1 %vm667_vm3, %v843_v11 }
 0x530   : > { %1210 = vmatprep.mubr.bf16.mxu0 %v4404_v0  ;;  %1283 = vmatprep.mubr.bf16.mxu1 %v4404_v0 }
 0x5ef   : > { %v888_v36 = vpop.f32.mrf.mxu0  ;;  %v929_v37 = vpop.f32.mrf.mxu1 }
 0x5f0   : > { %v936_v39 = vsel %vm455_vm1, %v888_v36, -inf  ;;  %v950_v43 = vsel %vm455_vm1, %v929_v37, -inf }
 0x5f1   : > { %v937_v26 = vrot.slane %v936_v39, 4  ;;  %v951_v27 = vrot.slane %v950_v43, 4  ;;  %v890_v46 = vpop.f32.mrf.mxu0  ;;  %v931_v47 = vpop.f32.mrf.mxu1 }
 0x5f2   : > { %v943_v48 = vsel %vm455_vm1, %v890_v46, -inf  ;;  %v957_v49 = vsel %vm455_vm1, %v931_v47, -inf }
 0x5f3   : > { %v938_v50 = vmax.f32 %v936_v39, %v937_v26  ;;  %v952_v45 = vmax.f32 %v950_v43, %v951_v27  ;;  %v944_v51 = vrot.slane %v943_v48, 4  ;;  %v958_v52 = vrot.slane %v957_v49, 4  ;;  %v892_v53 = vpop.f32.mrf.mxu0  ;;  %v933_v54 = vpop.f32.mrf.mxu1 }
 0x5f5   : > { %v939_v55 = vrot.slane %v938_v50, 2  ;;  %v953_v56 = vrot.slane %v952_v45, 2  ;;  %v945_v57 = vmax.f32 %v943_v48, %v944_v51  ;;  %v959_v58 = vmax.f32 %v957_v49, %v958_v52  ;;  %v893_v60 = vpop.f32.mrf.mxu0  ;;  %v934_v61 = vpop.f32.mrf.mxu1 }
 0x5f7   : > { %v940_v62 = vmax.f32 %v938_v50, %v939_v55  ;;  %v954_v63 = vmax.f32 %v952_v45, %v953_v56  ;;  %v946_v1 = vrot.slane %v945_v57, 2  ;;  %v960_v59 = vrot.slane %v959_v58, 2 }
 0x5f9   : > { %v941_v6 = vrot.slane %v940_v62, 1  ;;  %v955_v8 = vrot.slane %v954_v63, 1  ;;  %v947_v31 = vmax.f32 %v945_v57, %v946_v1  ;;  %v961_v11 = vmax.f32 %v959_v58, %v960_v59 }
 0x5fb   : > { %v942_v2 = vmax.f32 %v940_v62, %v941_v6  ;;  %v956_v29 = vmax.f32 %v954_v63, %v955_v8  ;;  %v948_v13 = vrot.slane %v947_v31, 1  ;;  %v962_v30 = vrot.slane %v961_v11, 1 }
 0x5fd   : > { %v964_v28 = vsub.f32 %v888_v36, %v942_v2  ;;  %v966_v3 = vsub.f32 %v929_v37, %v956_v29  ;;  %v949_v4 = vmax.f32 %v947_v31, %v948_v13  ;;  %v963_v14 = vmax.f32 %v961_v11, %v962_v30  ;;  %v1015_v29 = vpop.permute.xlu0 %1014 }
 0x5fe   : > { %v1022_v2 = vlaneseq }
 0x5ff   : > { %v968_v17 = vmul.f32 1.442695, %v964_v28  ;;  %v972_v18 = vmul.f32 1.442695, %v966_v3  ;;  %v965_v21 = vsub.f32 %v890_v46, %v949_v4  ;;  %v967_v22 = vsub.f32 %v931_v47, %v963_v14 }
 0x600   : > { %v1023_v13 = vshrl.u32 %v1022_v2, 7 }
 0x601   : > { %3116 = vpow2.f32 %v968_v17  ;;  %v970_v33 = vmul.f32 1.442695, %v965_v21  ;;  %v974_v34 = vmul.f32 1.442695, %v967_v22  ;;  %v1020_v30 = vpop.permute.xlu0 %1019 }
 0x602   : > { %3118 = vpow2.f32 %v972_v18  ;;  %v1024_v28 = vsub.s32 0, %v1023_v13  ;;  %v1056_v3 = vsub.s32 1, %v1023_v13 }
 0x603   : > { %3120 = vpow2.f32 %v970_v33 }
 0x604   : > { %3122 = vpow2.f32 %v974_v34 }
 0x60e   : > { %v3117_v40 = vpop.eup %3116 }
 0x60f   : > { %v3119_v42 = vpop.eup %3118  ;;  %v976_v39 = vsel %vm455_vm1, %v3117_v40, 0.0 }
 0x610   : > { %v3121_v43 = vpop.eup %3120  ;;  %v977_v26 = vrot.slane %v976_v39, 4  ;;  %v990_v36 = vsel %vm455_vm1, %v3119_v42, 0.0 }
 0x611   : > { %v3123_v37 = vpop.eup %3122  ;;  %v991_v27 = vrot.slane %v990_v36, 4  ;;  %v983_v48 = vsel %vm455_vm1, %v3121_v43, 0.0 }
 0x612   : > { %v978_v46 = vadd.f32 %v977_v26, %v976_v39  ;;  %v984_v47 = vrot.slane %v983_v48, 4  ;;  %v997_v49 = vsel %vm455_vm1, %v3123_v37, 0.0 }
 0x613   : > { %v992_v50 = vadd.f32 %v991_v27, %v990_v36  ;;  %v998_v45 = vrot.slane %v997_v49, 4 }
 0x614   : > { %v979_v51 = vrot.slane %v978_v46, 2  ;;  %v985_v52 = vadd.f32 %v984_v47, %v983_v48  ;;  %v1048_v48 = vpop.permute.xlu0 %1047 }
 0x615   : > { %v993_v53 = vrot.slane %v992_v50, 2  ;;  %v999_v54 = vadd.f32 %v998_v45, %v997_v49 }
 0x616   : > { %v980_v55 = vadd.f32 %v979_v51, %v978_v46  ;;  %v986_v56 = vrot.slane %v985_v52, 2  ;;  %v1052_v46 = vpop.permute.xlu1 %1051 }
 0x617   : > { %v994_v57 = vadd.f32 %v993_v53, %v992_v50  ;;  %v1000_v58 = vrot.slane %v999_v54, 2 }
 0x618   : > { %v981_v60 = vrot.slane %v980_v55, 1  ;;  %v987_v61 = vadd.f32 %v986_v56, %v985_v52 }
 0x619   : > { %v995_v62 = vrot.slane %v994_v57, 1  ;;  %v1001_v63 = vadd.f32 %v1000_v58, %v999_v54 }
 0x61a   : > { %v982_v1 = vadd.f32 %v981_v60, %v980_v55  ;;  %v988_v59 = vrot.slane %v987_v61, 1 }
 0x61b   : > { %v996_v6 = vadd.f32 %v995_v62, %v994_v57  ;;  %v1002_v8 = vrot.slane %v1001_v63, 1 }
 0x61c   : > { %3124 = vrcp.f32 %v982_v1  ;;  %v989_v31 = vadd.f32 %v988_v59, %v987_v61 }
 0x61d   : > { %3126 = vrcp.f32 %v996_v6  ;;  %v1003_v11 = vadd.f32 %v1002_v8, %v1001_v63 }
 0x61e   : > { %3128 = vrcp.f32 %v989_v31 }
 0x61f   : > { %3130 = vrcp.f32 %v1003_v11 }
 0x629   : > { %v3125_v4 = vpop.eup %3124 }
 0x62a   : > { %v3127_v14 = vpop.eup %3126  ;;  %v1008_v17 = vmul.f32 %v3125_v4, %v3117_v40 }
 0x62b   : > { %v3129_v18 = vpop.eup %3128  ;;  %v1010_v21 = vmul.f32 %v3127_v14, %v3119_v42  ;;  %v3088_v14 = vld [vmem:[%s4401_s3 + $0x10] sm:$0xff]  }
 0x62c   : > { %v3131_v22 = vpop.eup %3130  ;;  %v1009_v33 = vmul.f32 %v3129_v18, %v3121_v43  ;;  %v1025_v34 = vrot.slane %v1008_v17, %v1024_v28  ;;  %v1057_v39 = vrot.slane %v1008_v17, %v1056_v3 }
 0x62d   : > { %v1011_v26 = vmul.f32 %v3131_v22, %v3123_v37  ;;  %v1033_v36 = vrot.slane %v1010_v21, %v1024_v28  ;;  %v1065_v27 = vrot.slane %v1010_v21, %v1056_v3 }
 0x62e   : > { %v1029_v47 = vrot.slane %v1009_v33, %v1024_v28  ;;  %v1061_v49 = vrot.slane %v1009_v33, %v1056_v3  ;;  %v1038_v50 = vmul.f32 %v1025_v34, %v1015_v29  ;;  %v1042_v45 = vmul.f32 %v1025_v34, %v1020_v30 }
 0x62f   : > { %v1037_v51 = vrot.slane %v1011_v26, %v1024_v28  ;;  %v1069_v52 = vrot.slane %v1011_v26, %v1056_v3  ;;  %v1070_v53 = vmul.f32 %v1057_v39, %v1048_v48  ;;  %v1074_v54 = vmul.f32 %v1057_v39, %v1052_v46 }
 0x630   : > { %v1039_v40 = vmul.f32 %v1029_v47, %v1015_v29  ;;  %v1043_v55 = vmul.f32 %v1029_v47, %v1020_v30  ;;  %v1071_v42 = vmul.f32 %v1061_v49, %v1048_v48  ;;  %v1075_v56 = vmul.f32 %v1061_v49, %v1052_v46 }
 0x631   : > { %v1041_v43 = vmul.f32 %v1037_v51, %v1015_v29  ;;  %v1045_v57 = vmul.f32 %v1037_v51, %v1020_v30  ;;  %v1073_v58 = vmul.f32 %v1069_v52, %v1048_v48  ;;  %v1077_v37 = vmul.f32 %v1069_v52, %v1052_v46 }
 0x632   : > { %v1079_v60 = vadd.f32 %v1071_v42, %v1039_v40  ;;  %v1083_v61 = vadd.f32 %v1075_v56, %v1043_v55  ;;  %v1078_v62 = vadd.f32 %v1070_v53, %v1038_v50  ;;  %v1082_v63 = vadd.f32 %v1074_v54, %v1042_v45 }
 0x633   : > { %v1081_v1 = vadd.f32 %v1073_v58, %v1041_v43  ;;  %v1085_v59 = vadd.f32 %v1077_v37, %v1045_v57  ;;  %v1040_v6 = vmul.f32 %v1033_v36, %v1015_v29  ;;  %v1044_v8 = vmul.f32 %v1033_v36, %v1020_v30  ;;  %v3089_v29 = vld [vmem:[%s4401_s3 + $0x18] sm:$0xff]  }
 0x634   : > { %v1087_v31 = vpack.c.bf16 %v1083_v61, %v1079_v60  ;;  %v1072_v11 = vmul.f32 %v1065_v27, %v1048_v48  ;;  %v1076_v2 = vmul.f32 %v1065_v27, %v1052_v46  ;;  %v1086_v28 = vpack.c.bf16 %v1082_v63, %v1078_v62 }
 0x635   : > { %v1089_v13 = vpack.c.bf16 %v1085_v59, %v1081_v1 }
 0x636   : > { %1192 = vmatprep.subr.bf16.mxu0 %v1087_v31  ;;  %v1080_v3 = vadd.f32 %v1072_v11, %v1040_v6  ;;  %v1084_v4 = vadd.f32 %v1076_v2, %v1044_v8 }
 0x637   : > { %1265 = vmatprep.subr.bf16.mxu1 %v1089_v13  ;;  %1193 = vmatpush1.bf16.msra.mxu0 %v1086_v28 }
 0x638   : > { %v1088_v17 = vpack.c.bf16 %v1084_v4, %v1080_v3  ;;  %1428 = vmatprep.subr.bf16.mxu0 %v3360_v5  ;;  %v3090_v5 = vld [vmem:[%s4401_s3 + $0x20] sm:$0xff]  }
 0x63a   : > { %1266 = vmatpush1.bf16.msra.mxu1 %v1088_v17  ;;  %2897 = vmatmul.mubr.msk.bf16.vlgmr.msra.gmra.mxu0 %vm667_vm3, %v3088_v14 }
 0x63b   : > { %1220 = vmatprep.mubr.bf16.mxu0 %v4404_v0  ;;  %1501 = vmatprep.subr.bf16.mxu1 %v3446_v7 }
 0x63c   : > { %1429 = vmatpush1.bf16.msra.mxu0 %v3362_v9  ;;  %v3091_v9 = vld [vmem:[%s4401_s3 + $0x28] sm:$0xff]  }
 0x63d   : > { %2901 = vmatmul.mubr.msk.bf16.vlgmr.msra.gmra.mxu1 %vm667_vm3, %v3088_v14  ;;  %1430 = vmatprep.subr.bf16.mxu0 %v3364_v10  ;;  %v3092_v10 = vld [vmem:[%s4400_s2 + $0x40] sm:$0xff]  }
 0x63e   : > { %1293 = vmatprep.mubr.bf16.mxu1 %v4404_v0  ;;  %1502 = vmatpush1.bf16.msra.mxu1 %v3448_v12 }
 0x63f   : > { %1503 = vmatprep.subr.bf16.mxu1 %v3452_v16 }
 0x640   : > { %1431 = vmatpush1.bf16.msra.mxu0 %v3368_v15  ;;  %v3093_v15 = vld [vmem:[%s4400_s2 + $0x48] sm:$0xff]  }
 0x641   : > { %1432 = vmatprep.subr.bf16.mxu0 %v3371_v19  ;;  %v3094_v19 = vld [vmem:[%s4400_s2 + $0x50] sm:$0xff]  }
 0x642   : > { %2898 = vmatmul.mubr.msk.bf16.gmra.mxu0 %vm667_vm3, %v3089_v29  ;;  %1504 = vmatpush1.bf16.msra.mxu1 %v3454_v20 }
 0x643   : > { %1230 = vmatprep.mubr.bf16.mxu0 %v4404_v0  ;;  %1505 = vmatprep.subr.bf16.mxu1 %v3458_v32  ;;  %v1139_v32 = vpop.permute.xlu0 %1138 }
 0x644   : > { %1433 = vmatpush1.bf16.msra.mxu0 %v3374_v23  ;;  %v3095_v23 = vld [vmem:[%s4400_s2 + $0x58] sm:$0xff]  }
 0x645   : > { %2902 = vmatmul.mubr.msk.bf16.gmra.mxu1 %vm667_vm3, %v3089_v29  ;;  %1434 = vmatprep.subr.bf16.mxu0 %v3377_v24 }
 0x646   : > { %1303 = vmatprep.mubr.bf16.mxu1 %v4404_v0  ;;  %1506 = vmatpush1.bf16.msra.mxu1 %v3460_v35 }
 0x647   : > { %1507 = vmatprep.subr.bf16.mxu1 %v3464_v38  ;;  %v1144_v38 = vpop.permute.xlu1 %1143  ;;  %v1134_v33 = vpop.permute.xlu0 %1133 }
 0x648   : > { %1435 = vmatpush1.bf16.msra.mxu0 %v3380_v25 }
 0x64a   : > { %2899 = vmatmul.mubr.msk.bf16.gmra.mxu0 %vm667_vm3, %v3090_v5  ;;  %1508 = vmatpush1.bf16.msra.mxu1 %v3466_v41 }
 0x64b   : > { %1240 = vmatprep.mubr.bf16.mxu0 %v4404_v0  ;;  %v1129_v39 = vpop.permute.xlu1 %1128  ;;  %v3659_v47 = vpop.permute.xlu0 %1123 }
 0x64d   : > { %2903 = vmatmul.mubr.msk.bf16.gmra.mxu1 %vm667_vm3, %v3090_v5 }
 0x64e   : > { %1313 = vmatprep.mubr.bf16.mxu1 %v4404_v0 }
 0x64f   : > { %v3661_v50 = vpop.permute.xlu1 %1118  ;;  %v3663_v40 = vpop.permute.xlu0 %1113 }
 0x652   : > { %2900 = vmatmul.mubr.msk.bf16.gmra.mxu0 %vm667_vm3, %v3091_v9 }
 0x653   : > { %1452 = vmatprep.mubr.bf16.mxu0 %v4404_v0  ;;  %v3665_v42 = vpop.permute.xlu1 %1108 }
 0x655   : > { %2904 = vmatmul.mubr.msk.bf16.gmra.mxu1 %vm667_vm3, %v3091_v9 }
 0x656   : > { %1525 = vmatprep.mubr.bf16.mxu1 %v4404_v0 }
 0x65a   : > { %2909 = vmatmul.mubr.msk.bf16.vlgmr.msra.gmra.mxu0 %vm306_vm0, %v3092_v10 }
 0x65b   : > { %1462 = vmatprep.mubr.bf16.mxu0 %v4404_v0 }
 0x65d   : > { %2913 = vmatmul.mubr.msk.bf16.vlgmr.msra.gmra.mxu1 %vm306_vm0, %v3092_v10 }
 0x65e   : > { %1535 = vmatprep.mubr.bf16.mxu1 %v4404_v0 }
 0x662   : > { %2910 = vmatmul.mubr.msk.bf16.gmra.mxu0 %vm306_vm0, %v3093_v15 }
 0x663   : > { %1472 = vmatprep.mubr.bf16.mxu0 %v4404_v0 }
 0x665   : > { %2914 = vmatmul.mubr.msk.bf16.gmra.mxu1 %vm306_vm0, %v3093_v15 }
 0x666   : > { %1545 = vmatprep.mubr.bf16.mxu1 %v4404_v0 }
 0x66a   : > { %2911 = vmatmul.mubr.msk.bf16.gmra.mxu0 %vm306_vm0, %v3094_v19 }
 0x66b   : > { %1482 = vmatprep.mubr.bf16.mxu0 %v4404_v0 }
 0x66d   : > { %2915 = vmatmul.mubr.msk.bf16.gmra.mxu1 %vm306_vm0, %v3094_v19 }
 0x66e   : > { %1555 = vmatprep.mubr.bf16.mxu1 %v4404_v0 }
 0x672   : > { %2912 = vmatmul.mubr.msk.bf16.gmra.mxu0 %vm306_vm0, %v3095_v23 }
 0x673   : > { %1630 = vmatprep.mubr.bf16.mxu0 %v4404_v0 }
 0x675   : > { %2916 = vmatmul.mubr.msk.bf16.gmra.mxu1 %vm306_vm0, %v3095_v23 }
 0x676   : > { %1703 = vmatprep.mubr.bf16.mxu1 %v4404_v0 }
 0x6fa   : > { %v3645_v24 = vpop.f32.mrf.mxu0 }
 0x6fc   : > { %v1214_v25 = vpop.f32.mrf.mxu0 }
 0x6fd   : > { %v3647_v7 = vpop.f32.mrf.mxu1  ;;  %v3668_v43 = vadd.f32 %v1214_v25, %v3665_v42 }
 0x6fe   : > { %v1216_v12 = vpop.f32.mrf.mxu0 }
 0x6ff   : > { %v3649_v16 = vpop.f32.mrf.mxu1  ;;  %v3671_v58 = vadd.f32 %v1216_v12, %v3663_v40 }
 0x700   : > { %v1218_v20 = vpop.f32.mrf.mxu0 }
 0x701   : > { %v3651_v35 = vpop.f32.mrf.mxu1  ;;  %v3674_v37 = vadd.f32 %v1218_v20, %v3663_v40 }
 0x702   : > { %v1222_v41 = vpop.f32.mrf.mxu0 }
 0x703   : > { %v1291_v30 = vpop.f32.mrf.mxu1  ;;  %v3680_v61 = vadd.f32 %v1222_v41, %v3661_v50 }
 0x704   : > { %v1224_v18 = vpop.f32.mrf.mxu0  ;;  %v3677_v60 = vadd.f32 %v1291_v30, %v3663_v40 }
 0x705   : > { %v3653_v21 = vpop.f32.mrf.mxu1  ;;  %v1225_v63 = vadd.f32 %v1224_v18, %v3661_v50 }
 0x706   : > { %v1226_v22 = vpop.f32.mrf.mxu0 }
 0x707   : > { %v3655_v34 = vpop.f32.mrf.mxu1  ;;  %v3684_v31 = vadd.f32 %v1226_v22, %v3659_v47 }
 0x708   : > { %v1228_v26 = vpop.f32.mrf.mxu0 }
 0x709   : > { %v3657_v36 = vpop.f32.mrf.mxu1  ;;  %v1229_v11 = vadd.f32 %v1228_v26, %v3659_v47 }
 0x70a   : > { %v1232_v27 = vpop.f32.mrf.mxu0 }
 0x70b   : > { %v1301_v48 = vpop.f32.mrf.mxu1  ;;  %v1233_v4 = vadd.f32 %v1232_v27, %v1129_v39 }
 0x70c   : > { %v1234_v46 = vpop.f32.mrf.mxu0  ;;  %v3688_v3 = vadd.f32 %v1301_v48, %v3659_v47 }
 0x70d   : > { %v1305_v49 = vpop.f32.mrf.mxu1  ;;  %v1235_v2 = vadd.f32 %v1234_v46, %v1129_v39 }
 0x70e   : > { %v1236_v45 = vpop.f32.mrf.mxu0 }
 0x70f   : > { %v1307_v51 = vpop.f32.mrf.mxu1  ;;  %v1237_v14 = vadd.f32 %v1236_v45, %v1134_v33  ;;  %v1341_v41 = vmax.f32 %v1235_v2, 0.0 }
 0x710   : > { %v1238_v52 = vpop.f32.mrf.mxu0  ;;  %v1308_v30 = vadd.f32 %v1307_v51, %v1129_v39 }
 0x711   : > { %v1309_v53 = vpop.f32.mrf.mxu1  ;;  %v1239_v1 = vadd.f32 %v1238_v52, %v1134_v33  ;;  %v1344_v26 = vmax.f32 %v1237_v14, 0.0  ;;  %v1328_v14 = vmax.f32 %v3671_v58, 0.0 }
 0x712   : > { %v1242_v54 = vpop.f32.mrf.mxu0  ;;  %v1310_v48 = vadd.f32 %v1309_v53, %v1134_v33  ;;  %v1343_v51 = vmax.f32 %v1308_v30, 0.0 }
 0x713   : > { %v1311_v55 = vpop.f32.mrf.mxu1  ;;  %v1243_v13 = vadd.f32 %v1242_v54, %v1139_v32  ;;  %v1345_v19 = vmax.f32 %v1239_v1, 0.0 }
 0x714   : > { %v1244_v56 = vpop.f32.mrf.mxu0  ;;  %v1312_v5 = vadd.f32 %v1311_v55, %v1134_v33  ;;  %v1300_v33 = vadd.f32 %v3657_v36, %v3659_v47  ;;  %v1346_v53 = vmax.f32 %v1310_v48, 0.0  ;;  %v1213_v36 = vadd.f32 %v3645_v24, %v3665_v42 }
 0x715   : > { %v1315_v57 = vpop.f32.mrf.mxu1  ;;  %v1245_v59 = vadd.f32 %v1244_v56, %v1139_v32  ;;  %v1348_v18 = vmax.f32 %v1243_v13, 0.0  ;;  %v1337_v56 = vmax.f32 %v1229_v11, 0.0  ;;  %v1336_v11 = vmax.f32 %v3684_v31, 0.0 }
 0x716   : > { %v1246_v62 = vpop.f32.mrf.mxu0  ;;  %v1316_v23 = vadd.f32 %v1315_v57, %v1139_v32  ;;  %v1347_v45 = vmax.f32 %v1312_v5, 0.0  ;;  %v1340_v57 = vmax.f32 %v1233_v4, 0.0  ;;  %v1296_v13 = vadd.f32 %v3653_v21, %v3661_v50 }
 0x717   : > { %v1317_v6 = vpop.f32.mrf.mxu1  ;;  %v1247_v8 = vadd.f32 %v1246_v62, %v1144_v38  ;;  %v1349_v25 = vmax.f32 %v1245_v59, 0.0  ;;  %v1306_v62 = vadd.f32 %v1305_v49, %v1129_v39  ;;  %v1339_v39 = vmax.f32 %v3688_v3, 0.0 }
 0x718   : > { %v1248_v28 = vpop.f32.mrf.mxu0  ;;  %v1318_v9 = vadd.f32 %v1317_v6, %v1139_v32  ;;  %v1365_v6 = vpack.c.bf16 %v1345_v19, %v1341_v41  ;;  %v1350_v1 = vmax.f32 %v1316_v23, 0.0  ;;  %v1298_v32 = vadd.f32 %v3655_v34, %v3661_v50  ;;  %v3098_v19 = vld [vmem:[%s4400_s2 + $0x30] sm:$0xff]   ;;  %v3099_v23 = vld [vmem:[%s4400_s2 + $0x38] sm:$0xff]  }
 0x719   : > { %v1319_v17 = vpop.f32.mrf.mxu1  ;;  %v1249_v29 = vadd.f32 %v1248_v28, %v1144_v38  ;;  %v1352_v10 = vmax.f32 %v1247_v8, 0.0  ;;  %v1364_v49 = vpack.c.bf16 %v1344_v26, %v1340_v57  ;;  %v1367_v2 = vpack.c.bf16 %v1347_v45, %v1343_v51 }
 0x71a   : > { %v1320_v15 = vadd.f32 %v1319_v17, %v1144_v38  ;;  %v1351_v52 = vmax.f32 %v1318_v9, 0.0  ;;  %v1329_v34 = vmax.f32 %v3674_v37, 0.0  ;;  %v1288_v47 = vadd.f32 %v3649_v16, %v3665_v42 }
 0x71b   : > { %v1353_v12 = vmax.f32 %v1249_v29, 0.0  ;;  %v1321_v20 = vpop.f32.mrf.mxu1  ;;  %v1368_v54 = vpack.c.bf16 %v1352_v10, %v1348_v18  ;;  %v1332_v31 = vmax.f32 %v3680_v61, 0.0  ;;  %v1335_v3 = vmax.f32 %v1298_v32, 0.0 }
 0x71c   : > { %v1322_v22 = vadd.f32 %v1321_v20, %v1144_v38  ;;  %v1354_v46 = vmax.f32 %v1320_v15, 0.0  ;;  %v1333_v38 = vmax.f32 %v1225_v63, 0.0  ;;  %v1342_v63 = vmax.f32 %v1306_v62, 0.0 }
 0x71d   : > { %v1369_v27 = vpack.c.bf16 %v1353_v12, %v1349_v25  ;;  %v1325_v4 = vmax.f32 %v3668_v43, 0.0  ;;  %v1290_v37 = vadd.f32 %v3651_v35, %v3663_v40  ;;  %v1338_v21 = vmax.f32 %v1300_v33, 0.0  ;;  %v1454_v25 = vpop.f32.mrf.mxu0  ;;  %v1527_v12 = vpop.f32.mrf.mxu1 }
 0x71e   : > { %v1355_v55 = vmax.f32 %v1322_v22, 0.0  ;;  %v1370_v8 = vpack.c.bf16 %v1354_v46, %v1350_v1  ;;  %v1361_v28 = vpack.c.bf16 %v1337_v56, %v1333_v38  ;;  %v1366_v50 = vpack.c.bf16 %v1346_v53, %v1342_v63 }
 0x71f   : > { %1606 = vmatprep.subr.bf16.mxu0 %v1369_v27  ;;  %v1331_v24 = vmax.f32 %v3677_v60, 0.0  ;;  %v1360_v17 = vpack.c.bf16 %v1336_v11, %v1332_v31  ;;  %v1363_v29 = vpack.c.bf16 %v1339_v39, %v1335_v3  ;;  %v1286_v16 = vadd.f32 %v3647_v7, %v3665_v42  ;;  %v3096_v60 = vld [vmem:[%s4400_s2 + $0x20] sm:$0xff]   ;;  %v3097_v42 = vld [vmem:[%s4400_s2 + $0x28] sm:$0xff]   ;;  %v1456_v20 = vpop.f32.mrf.mxu0  ;;  %v1529_v41 = vpop.f32.mrf.mxu1 }
 0x720   : > { %v1371_v59 = vpack.c.bf16 %v1355_v55, %v1351_v52  ;;  %1607 = vmatpush1.bf16.msra.mxu0 %v1368_v54  ;;  %v1357_v61 = vpack.c.bf16 %v1329_v34, %v1325_v4  ;;  %v1334_v5 = vmax.f32 %v1296_v13, 0.0  ;;  %v1324_v9 = vmax.f32 %v1213_v36, 0.0  ;;  %v3783_v31 = vpop.permute.xlu0 %1789 }
 0x721   : > { %1608 = vmatprep.subr.bf16.mxu0 %v1365_v6  ;;  %v1327_v43 = vmax.f32 %v1288_v47, 0.0  ;;  %v1330_v35 = vmax.f32 %v1290_v37, 0.0  ;;  %v1326_v58 = vmax.f32 %v1286_v16, 0.0  ;;  %v1458_v30 = vpop.f32.mrf.mxu0  ;;  %v3739_v18 = vpop.f32.mrf.mxu1 }
 0x722   : > { %1679 = vmatprep.subr.bf16.mxu1 %v1371_v59  ;;  %v1362_v40 = vpack.c.bf16 %v1338_v21, %v1334_v5  ;;  %v1356_v10 = vpack.c.bf16 %v1328_v14, %v1324_v9 }
 0x723   : > { %1680 = vmatpush1.bf16.msra.mxu1 %v1370_v8  ;;  %v1359_v15 = vpack.c.bf16 %v1331_v24, %v1327_v43  ;;  %v1358_v7 = vpack.c.bf16 %v1330_v35, %v1326_v58  ;;  %v1460_v22 = vpop.f32.mrf.mxu0  ;;  %v3741_v26 = vpop.f32.mrf.mxu1 }
 0x724   : > { %1681 = vmatprep.subr.bf16.mxu1 %v1367_v2  ;;  %1609 = vmatpush1.bf16.msra.mxu0 %v1364_v49  ;;  %v3775_v49 = vpop.permute.xlu1 %1784 }
 0x725   : > { %1610 = vmatprep.subr.bf16.mxu0 %v1361_v28  ;;  %v1464_v48 = vpop.f32.mrf.mxu0  ;;  %v3743_v46 = vpop.f32.mrf.mxu1 }
 0x727   : > { %1682 = vmatpush1.bf16.msra.mxu1 %v1366_v50  ;;  %v1466_v27 = vpop.f32.mrf.mxu0  ;;  %v3745_v45 = vpop.f32.mrf.mxu1 }
 0x728   : > { %1683 = vmatprep.subr.bf16.mxu1 %v1363_v29  ;;  %1611 = vmatpush1.bf16.msra.mxu0 %v1360_v17  ;;  %v1775_v28 = vpop.permute.xlu1 %1774  ;;  %v3785_v17 = vpop.permute.xlu0 %1779 }
 0x729   : > { %1612 = vmatprep.subr.bf16.mxu0 %v1357_v61  ;;  %v3747_v52 = vpop.f32.mrf.mxu0  ;;  %v3749_v54 = vpop.f32.mrf.mxu1 }
 0x72b   : > { %1684 = vmatpush1.bf16.msra.mxu1 %v1362_v40  ;;  %v3751_v55 = vpop.f32.mrf.mxu0  ;;  %v3753_v56 = vpop.f32.mrf.mxu1 }
 0x72c   : > { %1685 = vmatprep.subr.bf16.mxu1 %v1359_v15  ;;  %1613 = vmatpush1.bf16.msra.mxu0 %v1356_v10  ;;  %v1765_v21 = vpop.permute.xlu1 %1764  ;;  %v3789_v58 = vpop.permute.xlu0 %1769 }
 0x72d   : > { %v1474_v62 = vpop.f32.mrf.mxu0  ;;  %v1547_v6 = vpop.f32.mrf.mxu1 }
 0x72f   : > { %1686 = vmatpush1.bf16.msra.mxu1 %v1358_v7  ;;  %2921 = vmatmul.mubr.msk.bf16.vlgmr.msra.gmra.mxu0 %vm306_vm0, %v3096_v60  ;;  %v1476_v1 = vpop.f32.mrf.mxu0  ;;  %v3755_v32 = vpop.f32.mrf.mxu1 }
 0x730   : > { %1640 = vmatprep.mubr.bf16.mxu0 %v4404_v0  ;;  %v1755_v9 = vpop.permute.xlu1 %1754 }
 0x731   : > { %v3757_v57 = vpop.f32.mrf.mxu0  ;;  %v3759_v51 = vpop.f32.mrf.mxu1 }
 0x732   : > { %2925 = vmatmul.mubr.msk.bf16.vlgmr.msra.gmra.mxu1 %vm306_vm0, %v3096_v60 }
 0x733   : > { %1713 = vmatprep.mubr.bf16.mxu1 %v4404_v0  ;;  %v3761_v59 = vpop.f32.mrf.mxu0  ;;  %v3763_v38 = vpop.f32.mrf.mxu1 }
 0x735   : > { %v3765_v33 = vpop.f32.mrf.mxu0  ;;  %v3767_v53 = vpop.f32.mrf.mxu1 }
 0x737   : > { %2922 = vmatmul.mubr.msk.bf16.gmra.mxu0 %vm306_vm0, %v3097_v42  ;;  %v3769_v8 = vpop.f32.mrf.mxu0  ;;  %v3771_v11 = vpop.f32.mrf.mxu1 }
 0x738   : > { %1650 = vmatprep.mubr.bf16.mxu0 %v4404_v0 }
 0x739   : > { %v3773_v39 = vpop.f32.mrf.mxu0  ;;  %v3777_v2 = vpop.f32.mrf.mxu1 }
 0x73a   : > { %2926 = vmatmul.mubr.msk.bf16.gmra.mxu1 %vm306_vm0, %v3097_v42  ;;  %4453 = vst [vmem:[#allocation5_spill] sm:$0xff] %v3777_v2 }
 0x73b   : > { %1723 = vmatprep.mubr.bf16.mxu1 %v4404_v0  ;;  %v3779_v34 = vpop.f32.mrf.mxu0  ;;  %v3781_v63 = vpop.f32.mrf.mxu1 }
 0x73c   : > { %4454 = vst [vmem:[#allocation6_spill] sm:$0xff] %v3779_v34  ;;  %4455 = vst [vmem:[#allocation7_spill] sm:$0xff] %v3781_v63 }
 0x73f   : > { %2923 = vmatmul.mubr.msk.bf16.gmra.mxu0 %vm306_vm0, %v3098_v19 }
 0x740   : > { %1660 = vmatprep.mubr.bf16.mxu0 %v4404_v0 }
 0x742   : > { %2927 = vmatmul.mubr.msk.bf16.gmra.mxu1 %vm306_vm0, %v3098_v19 }
 0x743   : > { %1733 = vmatprep.mubr.bf16.mxu1 %v4404_v0 }
 0x747   : > { %2924 = vmatmul.mubr.msk.bf16.gmra.mxu0 %vm306_vm0, %v3099_v23 }
 0x748   : > { %1934 = vmatprep.mubr.bf16.mxu0 %v4404_v0 }
 0x74a   : > { %2928 = vmatmul.mubr.msk.bf16.gmra.mxu1 %vm306_vm0, %v3099_v23 }
 0x74b   : > { %2107 = vmatprep.mubr.bf16.mxu1 %v4404_v0 }
 0x7ef   : > { %v1632_v13 = vpop.f32.mrf.mxu0 }
 0x7f0   : > { %v1633_v29 = vadd.f32 %v1632_v13, %v1454_v25 }
 0x7f1   : > { %v1634_v36 = vpop.f32.mrf.mxu0 }
 0x7f2   : > { %v1705_v47 = vpop.f32.mrf.mxu1  ;;  %v1635_v43 = vadd.f32 %v1634_v36, %v1456_v20  ;;  %v3787_v40 = vadd.f32 %v1755_v9, %v1633_v29 }
 0x7f3   : > { %v1636_v3 = vpop.f32.mrf.mxu0  ;;  %v1706_v60 = vadd.f32 %v1705_v47, %v1527_v12 }
 0x7f4   : > { %v1707_v4 = vpop.f32.mrf.mxu1  ;;  %v3791_v19 = vadd.f32 %v1755_v9, %v1635_v43  ;;  %v4419_v13 = vmax.f32 %v3787_v40, 0.0  ;;  %v3794_v63 = vadd.f32 %v1636_v3, %v1458_v30 }
 0x7f5   : > { %v1638_v37 = vpop.f32.mrf.mxu0  ;;  %v1708_v23 = vadd.f32 %v1707_v4, %v1529_v41  ;;  %v3796_v34 = vadd.f32 %v1755_v9, %v1706_v60 }
 0x7f6   : > { %v1709_v50 = vpop.f32.mrf.mxu1  ;;  %v1639_v20 = vadd.f32 %v1638_v37, %v1460_v22  ;;  %v4418_v41 = vmax.f32 %v3791_v19, 0.0 }
 0x7f7   : > { %v1642_v14 = vpop.f32.mrf.mxu0 }
 0x7f8   : > { %v1711_v24 = vpop.f32.mrf.mxu1  ;;  %v1643_v36 = vadd.f32 %v1642_v14, %v1464_v48  ;;  %v3808_v48 = vpop.permute.xlu0 %1759 }
 0x7f9   : > { %v1644_v16 = vpop.f32.mrf.mxu0  ;;  %v3816_v37 = vadd.f32 %v3808_v48, %v1639_v20  ;;  %v3819_v14 = vadd.f32 %v1711_v24, %v3741_v26 }
 0x7fa   : > { %v1715_v61 = vpop.f32.mrf.mxu1  ;;  %v1645_v7 = vadd.f32 %v1644_v16, %v1466_v27 }
 0x7fb   : > { %v1646_v5 = vpop.f32.mrf.mxu0  ;;  %v1716_v12 = vadd.f32 %v1715_v61, %v3743_v46  ;;  %4458 = vst [vmem:[#allocation10_spill] sm:$0xff] %v3816_v37 }
 0x7fc   : > { %v1717_v35 = vpop.f32.mrf.mxu1  ;;  %v3799_v27 = vadd.f32 %v1765_v21, %v1645_v7 }
 0x7fd   : > { %v1648_v10 = vpop.f32.mrf.mxu0  ;;  %v1718_v46 = vadd.f32 %v1717_v35, %v3745_v45  ;;  %v3824_v43 = vadd.f32 %v1765_v21, %v1716_v12  ;;  %v3828_v45 = vadd.f32 %v1646_v5, %v3747_v52 }
 0x7fe   : > { %v1719_v15 = vpop.f32.mrf.mxu1  ;;  %v1649_v61 = vadd.f32 %v1648_v10, %v3751_v55 }
 0x7ff   : > { %v1652_v42 = vpop.f32.mrf.mxu0  ;;  %v1803_v55 = vadd.f32 %v1765_v21, %v1718_v46 }
 0x800   : > { %v1721_v0 = vpop.f32.mrf.mxu1  ;;  %v1653_v25 = vadd.f32 %v1652_v42, %v1474_v62  ;;  %v3802_v62 = vadd.f32 %v1755_v9, %v1708_v23  ;;  %v3841_v5 = vadd.f32 %v3789_v58, %v1649_v61 }
 0x801   : > { %v1654_v44 = vpop.f32.mrf.mxu0 }
 0x802   : > { %v1725_v29 = vpop.f32.mrf.mxu1  ;;  %v1655_v2 = vadd.f32 %v1654_v44, %v1476_v1  ;;  %v3804_v4 = vadd.f32 %v1775_v28, %v1653_v25  ;;  %v3811_v44 = vadd.f32 %v1709_v50, %v3739_v18  ;;  %v4422_v18 = vmax.f32 %v3799_v27, 0.0 }
 0x803   : > { %v1726_v47 = vadd.f32 %v1725_v29, %v1547_v6  ;;  %v1656_v16 = vpop.f32.mrf.mxu0 }
 0x804   : > { %4456 = vst [vmem:[#allocation8_spill] sm:$0xff] %v3804_v4  ;;  %v3806_v30 = vadd.f32 %v1775_v28, %v1655_v2  ;;  %v1727_v22 = vpop.f32.mrf.mxu1  ;;  %v3821_v2 = vadd.f32 %v1765_v21, %v1643_v36  ;;  %v4415_v35 = vmax.f32 %v3804_v4, 0.0  ;;  %v1657_v21 = vadd.f32 %v1656_v16, %v3757_v57 }
 0x805   : > { %v1810_v1 = vadd.f32 %v1775_v28, %v1726_v47  ;;  %v1728_v6 = vadd.f32 %v1727_v22, %v3755_v32  ;;  %v1658_v3 = vpop.f32.mrf.mxu0 }
 0x806   : > { %4457 = vst [vmem:[#allocation9_spill] sm:$0xff] %v3806_v30  ;;  %v1729_v9 = vpop.f32.mrf.mxu1  ;;  %v4414_v26 = vmax.f32 %v3806_v30, 0.0  ;;  %v1659_v42 = vadd.f32 %v1658_v3, %v3761_v59 }
 0x807   : > { %v1811_v32 = vadd.f32 %v1775_v28, %v1728_v6  ;;  %v1662_v50 = vpop.f32.mrf.mxu0  ;;  %v3831_v60 = vmax.f32 %v1810_v1, 0.0  ;;  %v1720_v28 = vadd.f32 %v1719_v15, %v3749_v54  ;;  %v1730_v59 = vadd.f32 %v1729_v9, %v3759_v51  ;;  %v4465_v1 = vld [vmem:[#allocation6_spill] sm:$0xff] }
 0x808   : > { %v1731_v24 = vpop.f32.mrf.mxu1  ;;  %v1663_v7 = vadd.f32 %v1662_v50, %v3765_v33  ;;  %v1722_v33 = vadd.f32 %v1721_v0, %v3753_v56  ;;  %v3866_v56 = vadd.f32 %v3785_v17, %v1659_v42  ;;  %v3883_v50 = vmax.f32 %v1803_v55, 0.0 }
 0x809   : > { %4459 = vst [vmem:[#allocation11_spill] sm:$0xff] %v3831_v60  ;;  %v3835_v10 = vmax.f32 %v1811_v32, 0.0  ;;  %v1732_v23 = vadd.f32 %v1731_v24, %v3763_v38  ;;  %v1664_v52 = vpop.f32.mrf.mxu0  ;;  %v3858_v47 = vadd.f32 %v3831_v60, %v4415_v35  ;;  %v4467_v32 = vld [vmem:[#allocation5_spill] sm:$0xff] }
 0x80a   : > { %v3844_v25 = vadd.f32 %v3775_v49, %v1663_v7  ;;  %v1735_v20 = vpop.f32.mrf.mxu1  ;;  %v1665_v36 = vadd.f32 %v1664_v52, %v3769_v8  ;;  %4463 = vst [vmem:[#allocation15_spill] sm:$0xff] %v3866_v56  ;;  %v1807_v24 = vadd.f32 %v3789_v58, %v1722_v33  ;;  %v3887_v7 = vadd.f32 %v3785_v17, %v1657_v21 }
 0x80b   : > { %4460 = vst [vmem:[#allocation12_spill] sm:$0xff] %v3835_v10  ;;  %v1736_v38 = vadd.f32 %v1735_v20, %v3767_v53  ;;  %v1666_v29 = vpop.f32.mrf.mxu0  ;;  %v3863_v0 = vadd.f32 %v3835_v10, %v4414_v26  ;;  %v1815_v57 = vadd.f32 %v3785_v17, %v1732_v23  ;;  %v1814_v52 = vadd.f32 %v3785_v17, %v1730_v59 }
 0x80c   : > { %4461 = vst [vmem:[#allocation13_spill] sm:$0xff] %v3844_v25  ;;  %v3852_v54 = vadd.f32 %v3775_v49, %v1665_v36  ;;  %v1737_v15 = vpop.f32.mrf.mxu1  ;;  %v1667_v12 = vadd.f32 %v1666_v29, %v3773_v39  ;;  %v4411_v39 = vmax.f32 %v3844_v25, 0.0  ;;  %4468 = vst [vmem:[#allocation5_spill] sm:$0xff] %v3887_v7  ;;  %v4471_v36 = vld [vmem:[#allocation7_spill] sm:$0xff]  ;;  %v4412_v55 = vmax.f32 %v3866_v56, 0.0 }
 0x80d   : > { %v1818_v51 = vadd.f32 %v3775_v49, %v1736_v38  ;;  %v1738_v53 = vadd.f32 %v1737_v15, %v3771_v11  ;;  %v1668_v8 = vpop.f32.mrf.mxu0  ;;  %v2304_v46 = vadd.f32 %v3863_v0, %v3858_v47  ;;  %v3898_v29 = vmax.f32 %v1815_v57, 0.0 }
 0x80e   : > { %4462 = vst [vmem:[#allocation14_spill] sm:$0xff] %v3852_v54  ;;  %v3873_v16 = vadd.f32 %v3783_v31, %v1667_v12  ;;  %v1739_v22 = vpop.f32.mrf.mxu1  ;;  %v1669_v6 = vadd.f32 %v1668_v8, %v4465_v1  ;;  %v4410_v61 = vmax.f32 %v3852_v54, 0.0  ;;  %v1799_v57 = vadd.f32 %v3808_v48, %v3819_v14 }
 0x80f   : > { %v3878_v3 = vmax.f32 %v1818_v51, 0.0  ;;  %v1819_v9 = vadd.f32 %v3775_v49, %v1738_v53  ;;  %v1740_v11 = vadd.f32 %v1739_v22, %v4467_v32  ;;  %2305 = vadd.xlane.f32.xlu0 %v2304_v46  ;;  %4472 = vst [vmem:[#allocation7_spill] sm:$0xff] %v3898_v29  ;;  %v3912_v51 = vmax.f32 %v3802_v62, 0.0 }
 0x810   : > { %4464 = vst [vmem:[#allocation16_spill] sm:$0xff] %v3873_v16  ;;  %v3890_v42 = vadd.f32 %v3783_v31, %v1669_v6  ;;  %v1741_v23 = vpop.f32.mrf.mxu1  ;;  %v4409_v33 = vmax.f32 %v3873_v16, 0.0  ;;  %v4423_v53 = vmax.f32 %v3821_v2, 0.0  ;;  %v3918_v8 = vmax.f32 %v3824_v43, 0.0 }
 0x811   : > { %4466 = vst [vmem:[#allocation6_spill] sm:$0xff] %v3878_v3  ;;  %v3893_v20 = vmax.f32 %v1819_v9, 0.0  ;;  %v1822_v49 = vadd.f32 %v3783_v31, %v1740_v11  ;;  %v1742_v38 = vadd.f32 %v1741_v23, %v4471_v36  ;;  %v1868_v17 = vadd.f32 %v3878_v3, %v4411_v39 }
 0x812   : > { %4469 = vst [vmem:[#allocation17_spill] sm:$0xff] %v3890_v42  ;;  %v4408_v21 = vmax.f32 %v3890_v42, 0.0  ;;  %v1806_v22 = vadd.f32 %v3789_v58, %v1720_v28  ;;  %v4413_v62 = vmax.f32 %v3887_v7, 0.0  ;;  %v3928_v6 = vmax.f32 %v1814_v52, 0.0 }
 0x813   : > { %4470 = vst [vmem:[#allocation18_spill] sm:$0xff] %v3893_v20  ;;  %v3902_v15 = vmax.f32 %v1822_v49, 0.0  ;;  %v1823_v12 = vadd.f32 %v3783_v31, %v1742_v38  ;;  %v1869_v59 = vadd.f32 %v3893_v20, %v4410_v61  ;;  %v3922_v31 = vadd.f32 %v3789_v58, %v3828_v45 }
 0x814   : > { %4475 = vst [vmem:[#allocation21_spill] sm:$0xff] %v3928_v6  ;;  %v1861_v43 = vadd.f32 %v3883_v50, %v4422_v18  ;;  %v4420_v45 = vmax.f32 %v3841_v5, 0.0  ;;  %v3937_v9 = vmax.f32 %v1807_v24, 0.0  ;;  %v1867_v28 = vadd.f32 %v3898_v29, %v4412_v55 }
 0x815   : > { %4473 = vst [vmem:[#allocation19_spill] sm:$0xff] %v3902_v15  ;;  %v3925_v46 = vmax.f32 %v1823_v12, 0.0  ;;  %v2310_v1 = vadd.f32 %v1869_v59, %v1868_v17  ;;  %v1870_v14 = vadd.f32 %v3902_v15, %v4409_v33  ;;  %v3946_v32 = vmax.f32 %v3796_v34, 0.0 }
 0x816   : > { %v3950_v11 = vadd.f32 %v3808_v48, %v3794_v63  ;;  %v1798_v24 = vadd.f32 %v3808_v48, %v3811_v44  ;;  %v1860_v23 = vadd.f32 %v3918_v8, %v4423_v53  ;;  %v4421_v52 = vmax.f32 %v3922_v31, 0.0 }
 0x817   : > { %4474 = vst [vmem:[#allocation20_spill] sm:$0xff] %v3925_v46  ;;  %2311 = vadd.xlane.f32.xlu1 %v2310_v1  ;;  %v1871_v58 = vadd.f32 %v3925_v46, %v4408_v21  ;;  %v1857_v34 = vadd.f32 %v3912_v51, %v4418_v41  ;;  %v3961_v38 = vmax.f32 %v1806_v22, 0.0  ;;  %v1878_v12 = vpack.c.bf16 %v1870_v14, %v1868_v17 }
 0x818   : > { %v2298_v63 = vadd.f32 %v1861_v43, %v1860_v23  ;;  %v1866_v48 = vadd.f32 %v3928_v6, %v4413_v62  ;;  %v4416_v44 = vmax.f32 %v3816_v37, 0.0  ;;  %v3967_v1 = vmax.f32 %v1799_v57, 0.0 }
 0x819   : > { %v1879_v49 = vpack.c.bf16 %v1871_v58, %v1869_v59  ;;  %v2313_v36 = vadd.f32 %v1871_v58, %v1870_v14  ;;  %v1877_v59 = vpack.c.bf16 %v1867_v28, %v3863_v0  ;;  %v1863_v58 = vadd.f32 %v3937_v9, %v4420_v45 }
 0x81a   : > { %4476 = vst [vmem:[#allocation22_spill] sm:$0xff] %v3967_v1  ;;  %v1856_v17 = vadd.f32 %v3946_v32, %v4419_v13  ;;  %v4417_v22 = vmax.f32 %v3950_v11, 0.0  ;;  %v2307_v14 = vadd.f32 %v1867_v28, %v1866_v48  ;;  %v3977_v57 = vmax.f32 %v1798_v24, 0.0 }
 0x81b   : > { %1910 = vmatprep.subr.bf16.mxu0 %v1879_v49  ;;  %2314 = vadd.xlane.f32.xlu0 %v2313_v36  ;;  %v1876_v49 = vpack.c.bf16 %v1866_v48, %v3858_v47  ;;  %v1862_v0 = vadd.f32 %v3961_v38, %v4421_v52 }
 0x81c   : > { %2299 = vadd.xlane.f32.xlu1 %v2298_v63  ;;  %1911 = vmatpush1.bf16.msra.mxu0 %v1878_v12  ;;  %v2292_v36 = vadd.f32 %v1857_v34, %v1856_v17  ;;  %v1875_v63 = vpack.c.bf16 %v1863_v58, %v1861_v43  ;;  %v1859_v12 = vadd.f32 %v3967_v1, %v4416_v44  ;;  %v3100_v43 = vld [vmem:[%s4400_s2 + $0x60] sm:$0xff]  }
 0x81d   : > { %1912 = vmatprep.subr.bf16.mxu0 %v1877_v59  ;;  %v2301_v59 = vadd.f32 %v1863_v58, %v1862_v0  ;;  %v1874_v28 = vpack.c.bf16 %v1862_v0, %v1860_v23  ;;  %v1858_v47 = vadd.f32 %v3977_v57, %v4417_v22  ;;  %v1882_v23 = vld [vmem:[%s4402_s4 + $0xd8] sm:$0xff]  ;;  %v1950_v58 = vld [vmem:[%s4402_s4 + $0xf0] sm:$0xff]  ;;  %v1995_v0 = vld [vmem:[%s4402_s4 + $0x108] sm:$0xff] }
 0x81e   : > { %v1873_v24 = vpack.c.bf16 %v1859_v12, %v1857_v34  ;;  %v1949_v34 = vld [vmem:[%s4402_s4 + $0xe8] sm:$0xff] }
 0x81f   : > { %2308 = vadd.xlane.f32.xlu0 %v2307_v14  ;;  %v2295_v48 = vadd.f32 %v1859_v12, %v1858_v47  ;;  %v1872_v14 = vpack.c.bf16 %v1858_v47, %v1856_v17  ;;  %v1965_v17 = vld [vmem:[%s4402_s4 + $0xf8] sm:$0xff]  ;;  %v1998_v47 = vld [vmem:[%s4402_s4 + $0x120] sm:$0xff] }
 0x820   : > { %2293 = vadd.xlane.f32.xlu1 %v2292_v36  ;;  %1913 = vmatpush1.bf16.msra.mxu0 %v1876_v49  ;;  %v4477_v49 = vmov 0.0   ;;  %v1883_v36 = vld [vmem:[%s4402_s4 + $0xe0] sm:$0xff]  ;;  %v1997_v12 = vld [vmem:[%s4402_s4 + $0x118] sm:$0xff] }
 0x821   : > { %1914 = vmatprep.subr.bf16.mxu0 %v1875_v63  ;;  %v1966_v63 = vld [vmem:[%s4402_s4 + $0x100] sm:$0xff] }
 0x823   : > { %2302 = vadd.xlane.f32.xlu0 %v2301_v59  ;;  %v1996_v59 = vld [vmem:[%s4402_s4 + $0x110] sm:$0xff] }
 0x824   : > { %1915 = vmatpush1.bf16.msra.mxu0 %v1874_v28  ;;  %v1999_v28 = vld [vmem:[%s4402_s4 + $0x128] sm:$0xff] }
 0x825   : > { %1916 = vmatprep.subr.bf16.mxu0 %v1873_v24  ;;  %v2001_v24 = vld [vmem:[%s4402_s4 + $0x138] sm:$0xff] }
 0x827   : > { %2296 = vadd.xlane.f32.xlu0 %v2295_v48  ;;  %v2000_v48 = vld [vmem:[%s4402_s4 + $0x130] sm:$0xff] }
 0x828   : > { %1917 = vmatpush1.bf16.msra.mxu0 %v1872_v14  ;;  %v2164_v14 = vld [vmem:[%s4402_s4 + $0x148] sm:$0xff] }
 0x829   : > { %3009 = vmatprep.subr.bf16.mxu0 %v4477_v49 }
 0x82b   : > { %2930 = vmatmul.mubr.msk.bf16.vlgmr.msra.gmra.mxu0 %vm306_vm0, %v3100_v43  ;;  %v2002_v43 = vld [vmem:[%s4402_s4 + $0x140] sm:$0xff] }
 0x82c   : > { %3017 = vmatprep.mubr.msk.bf16.mxu0 %vm3260_vm2, %v4477_v49 }
 0x831   : > { %1886 = vperm.xlu1 %3081, %v1882_v23   ;;  %v2166_v23 = vld [vmem:[%s4402_s4 + $0x158] sm:$0xff] }
 0x835   : > { %1953 = vperm.xlu1 %3081, %v1949_v34   ;;  %v2165_v34 = vld [vmem:[%s4402_s4 + $0x150] sm:$0xff] }
 0x839   : > { %1958 = vperm.xlu1 %3081, %v1950_v58   ;;  %v2168_v58 = vld [vmem:[%s4402_s4 + $0x168] sm:$0xff] }
 0x83d   : > { %1969 = vperm.xlu1 %3081, %v1965_v17   ;;  %1891 = vperm.xlu0 %3080, %v1883_v36   ;;  %v2167_v17 = vld [vmem:[%s4402_s4 + $0x160] sm:$0xff]  ;;  %v2170_v36 = vld [vmem:[%s4402_s4 + $0x178] sm:$0xff] }
 0x841   : > { %2005 = vperm.xlu1 %3081, %v1995_v0   ;;  %1974 = vperm.xlu0 %3080, %v1966_v63   ;;  %v2169_v0 = vld [vmem:[%s4402_s4 + $0x170] sm:$0xff]  ;;  %v2228_v63 = vld [vmem:[%s4402_s4 + $0x188] sm:$0xff] }
 0x845   : > { %2015 = vperm.xlu1 %3081, %v1997_v12   ;;  %2010 = vperm.xlu0 %3080, %v1996_v59   ;;  %v2171_v12 = vld [vmem:[%s4402_s4 + $0x180] sm:$0xff]  ;;  %v2230_v59 = vld [vmem:[%s4402_s4 + $0x198] sm:$0xff] }
 0x849   : > { %2025 = vperm.xlu1 %3081, %v1999_v28   ;;  %2020 = vperm.xlu0 %3080, %v1998_v47   ;;  %v2229_v28 = vld [vmem:[%s4402_s4 + $0x190] sm:$0xff]  ;;  %v2232_v47 = vld [vmem:[%s4402_s4 + $0x1a8] sm:$0xff] }
 0x84d   : > { %2035 = vperm.xlu1 %3081, %v2001_v24   ;;  %2030 = vperm.xlu0 %3080, %v2000_v48   ;;  %v2231_v24 = vld [vmem:[%s4402_s4 + $0x1a0] sm:$0xff]  ;;  %v2234_v48 = vld [vmem:[%s4402_s4 + $0x1b8] sm:$0xff] }
 0x851   : > { %2174 = vperm.xlu1 %3081, %v2164_v14   ;;  %2040 = vperm.xlu0 %3080, %v2002_v43   ;;  %v2233_v14 = vld [vmem:[%s4402_s4 + $0x1b0] sm:$0xff]  ;;  %v2235_v43 = vld [vmem:[%s4402_s4 + $0x1c0] sm:$0xff] }
 0x855   : > { %2184 = vperm.xlu1 %3081, %v2166_v23   ;;  %2179 = vperm.xlu0 %3080, %v2165_v34  }
 0x859   : > { %2194 = vperm.xlu1 %3081, %v2168_v58   ;;  %2189 = vperm.xlu0 %3080, %v2167_v17  }
 0x85d   : > { %2204 = vperm.xlu1 %3081, %v2170_v36   ;;  %2199 = vperm.xlu0 %3080, %v2169_v0  }
 0x861   : > { %2238 = vperm.xlu1 %3081, %v2228_v63   ;;  %2209 = vperm.xlu0 %3080, %v2171_v12  }
 0x865   : > { %2248 = vperm.xlu1 %3081, %v2230_v59   ;;  %2243 = vperm.xlu0 %3080, %v2229_v28  }
 0x869   : > { %2258 = vperm.xlu1 %3081, %v2232_v47   ;;  %2253 = vperm.xlu0 %3080, %v2231_v24  }
 0x86d   : > { %2268 = vperm.xlu1 %3081, %v2234_v48   ;;  %2263 = vperm.xlu0 %3080, %v2233_v14  }
 0x871   : > { %2273 = vperm.xlu0 %3080, %v2235_v43  }
 0x898   : > { %v2306_v23 = vpop.xlane.xlu0 %2305 }
 0x899   : > { %v2320_v59 = vmul.f32 0.00390625, %v2306_v23 }
 0x8a0   : > { %v2312_v34 = vpop.xlane.xlu1 %2311 }
 0x8a1   : > { %v2322_v17 = vmul.f32 0.00390625, %v2312_v34 }
 0x8a4   : > { %v2315_v58 = vpop.xlane.xlu0 %2314 }
 0x8a5   : > { %v2323_v36 = vmul.f32 0.00390625, %v2315_v58  ;;  %v2300_v63 = vpop.xlane.xlu1 %2299 }
 0x8a6   : > { %v2318_v48 = vmul.f32 0.00390625, %v2300_v63 }
 0x8a7   : > { %v2327_v0 = vpack.c.bf16 %v2323_v36, %v2322_v17  ;;  %v3101_v17 = vld [vmem:[%s4400_s2 + $0x68] sm:$0xff]  }
 0x8a8   : > { %v2309_v12 = vpop.xlane.xlu0 %2308 }
 0x8a9   : > { %v2321_v28 = vmul.f32 0.00390625, %v2309_v12  ;;  %3010 = vmatpush3.bf16.msra.mxu0 %v2327_v0  ;;  %v2294_v21 = vpop.xlane.xlu1 %2293 }
 0x8aa   : > { %3011 = vmatprep.subr.bf16.mxu0 %v4477_v49  ;;  %v2316_v34 = vmul.f32 0.00390625, %v2294_v21 }
 0x8ab   : > { %v2326_v47 = vpack.c.bf16 %v2321_v28, %v2320_v59 }
 0x8ac   : > { %v2303_v24 = vpop.xlane.xlu0 %2302 }
 0x8ad   : > { %v2319_v14 = vmul.f32 0.00390625, %v2303_v24  ;;  %3012 = vmatpush3.bf16.msra.mxu0 %v2326_v47  ;;  %v1887_v36 = vpop.permute.xlu1 %1886 }
 0x8ae   : > { %3013 = vmatprep.subr.bf16.mxu0 %v4477_v49 }
 0x8af   : > { %v2325_v43 = vpack.c.bf16 %v2319_v14, %v2318_v48 }
 0x8b0   : > { %v2297_v33 = vpop.xlane.xlu0 %2296 }
 0x8b1   : > { %v2317_v58 = vmul.f32 0.00390625, %v2297_v33  ;;  %3014 = vmatpush3.bf16.msra.mxu0 %v2325_v43  ;;  %v1954_v0 = vpop.permute.xlu1 %1953 }
 0x8b2   : > { %3015 = vmatprep.subr.bf16.mxu0 %v4477_v49 }
 0x8b3   : > { %v2324_v23 = vpack.c.bf16 %v2317_v58, %v2316_v34 }
 0x8b5   : > { %3016 = vmatpush3.bf16.msra.mxu0 %v2324_v23  ;;  %v1959_v28 = vpop.permute.xlu1 %1958 }
 0x8b8   : > { %3018 = vmatmul.mubr.msk.bf16.vlgmr.msra.gmra.mxu0 %vm306_vm0, %v3101_v17  ;;  %v1892_v21 = vpop.permute.xlu0 %1891 }
 0x8b9   : > { %v1970_v17 = vpop.permute.xlu1 %1969 }
 0x8bc   : > { %v1975_v55 = vpop.permute.xlu0 %1974 }
 0x8eb   : > { %v1936_v63 = vpop.f32.mrf.mxu0 }
 0x8ec   : > { %v1937_v12 = vadd.f32 %v1936_v63, %v1887_v36 }
 0x8ed   : > { %v1938_v59 = vpop.f32.mrf.mxu0 }
 0x8ee   : > { %v1939_v47 = vadd.f32 %v1938_v59, %v1887_v36  ;;  %v1945_v33 = vmax.f32 %v1937_v12, 0.0 }
 0x8ef   : > { %v1940_v24 = vpop.f32.mrf.mxu0 }
 0x8f0   : > { %v1946_v48 = vmax.f32 %v1939_v47, 0.0  ;;  %v1941_v49 = vadd.f32 %v1940_v24, %v1892_v21  ;;  %v1961_v61 = vmul.f32 %v1954_v0, %v1945_v33  ;;  %v2331_v33 = vld [vmem:[%s4402_s4 + $0x1d0] sm:$0xff] }
 0x8f1   : > { %v1942_v14 = vpop.f32.mrf.mxu0 }
 0x8f2   : > { %v1962_v43 = vmul.f32 %v1954_v0, %v1946_v48  ;;  %v1947_v34 = vmax.f32 %v1941_v49, 0.0  ;;  %v1943_v58 = vadd.f32 %v1942_v14, %v1892_v21  ;;  %v1977_v35 = vadd.f32 %v1970_v17, %v1961_v61  ;;  %v3102_v0 = vld [vmem:[%s4401_s3 + $0x30] sm:$0xff]   ;;  %v3105_v61 = vld [vmem:[%s4401_s3 + $0x48] sm:$0xff]  }
 0x8f3   : > { %v4478_v21 = vmov 0  }
 0x8f4   : > { %v1963_v23 = vmul.f32 %v1959_v28, %v1947_v34  ;;  %v1948_v39 = vmax.f32 %v1943_v58, 0.0  ;;  %v1978_v62 = vadd.f32 %v1970_v17, %v1962_v43  ;;  %v1981_v22 = vmax.f32 %v1977_v35, 0.0  ;;  %v3106_v35 = vld [vmem:[%s4401_s3 + $0x50] sm:$0xff]   ;;  %v2387_v34 = vld [vmem:[%s4402_s4 + $0x1e8] sm:$0xff]  ;;  %v2384_v58 = vld [vmem:[%s4402_s4 + $0x1e0] sm:$0xff] }
 0x8f5   : > { %3023 = vmatprep.mubr.msk.bf16.mxu0 %vm667_vm3, %v3106_v35  ;;  %v3109_v35 = vld [vmem:[%s4401_s3 + $0x68] sm:$0xff]  }
 0x8f6   : > { %v1979_v26 = vadd.f32 %v1975_v55, %v1963_v23  ;;  %v1964_v63 = vmul.f32 %v1959_v28, %v1948_v39  ;;  %v1982_v59 = vmax.f32 %v1978_v62, 0.0  ;;  %v3103_v39 = vld [vmem:[%s4401_s3 + $0x38] sm:$0xff]  }
 0x8f8   : > { %v1980_v44 = vadd.f32 %v1975_v55, %v1964_v63  ;;  %v1983_v36 = vmax.f32 %v1979_v26, 0.0  ;;  %v3104_v26 = vld [vmem:[%s4401_s3 + $0x40] sm:$0xff]   ;;  %v2330_v55 = vld [vmem:[%s4402_s4 + $0x1c8] sm:$0xff]  ;;  %v2388_v63 = vld [vmem:[%s4402_s4 + $0x1f0] sm:$0xff] }
 0x8fa   : > { %v1984_v12 = vmax.f32 %v1980_v44, 0.0  ;;  %v1985_v24 = vpack.c.bf16 %v1983_v36, %v1981_v22  ;;  %v2383_v22 = vld [vmem:[%s4402_s4 + $0x1d8] sm:$0xff] }
 0x8fc   : > { %v1986_v47 = vpack.c.bf16 %v1984_v12, %v1982_v59 }
 0x8fe   : > { %2089 = vmatprep.subr.bf16.mxu1 %v1986_v47 }
 0x8ff   : > { %2090 = vmatpush1.bf16.msra.mxu1 %v1985_v24 }
 0x902   : > { %2935 = vmatmul.mubr.msk.bf16.vlgmr.msra.gmra.mxu1 %vm667_vm3, %v3102_v0 }
 0x903   : > { %2117 = vmatprep.mubr.bf16.mxu1 %v4478_v21 }
 0x90a   : > { %2936 = vmatmul.mubr.msk.bf16.gmra.mxu1 %vm667_vm3, %v3103_v39  ;;  %v3108_v39 = vld [vmem:[%s4401_s3 + $0x60] sm:$0xff]  }
 0x90b   : > { %2127 = vmatprep.mubr.bf16.mxu1 %v4478_v21 }
 0x912   : > { %2937 = vmatmul.mubr.msk.bf16.gmra.mxu1 %vm667_vm3, %v3104_v26  ;;  %v2404_v26 = vld [vmem:[%s4402_s4 + $0x208] sm:$0xff] }
 0x913   : > { %2137 = vmatprep.mubr.bf16.mxu1 %v4478_v21  ;;  %v3107_v21 = vld [vmem:[%s4401_s3 + $0x58] sm:$0xff]  }
 0x91a   : > { %2938 = vmatmul.mubr.msk.bf16.gmra.mxu1 %vm667_vm3, %v3105_v61 }
 0x978   : > { %v2374_v62 = vpop.f32.mrf.mxu0 }
 0x979   : > { %v2375_v44 = vadd.f32 %v2374_v62, %v2330_v55  ;;  %v2402_v55 = vld [vmem:[%s4402_s4 + $0x1f8] sm:$0xff] }
 0x97a   : > { %v3019_v28 = vpop.f32.mrf.mxu0 }
 0x97b   : > { %v2381_v48 = vmax.f32 %v2375_v44, 0.0  ;;  %v2517_v44 = vld [vmem:[%s4402_s4 + $0x248] sm:$0xff]  ;;  %v2405_v28 = vld [vmem:[%s4402_s4 + $0x210] sm:$0xff] }
 0x97c   : > { %v2377_v49 = vpop.f32.mrf.mxu0 }
 0x97d   : > { %v2385_v14 = vmul.f32 %v2383_v22, %v2381_v48  ;;  %v2378_v43 = vadd.f32 %v2377_v49, %v2331_v33  ;;  %v2515_v49 = vld [vmem:[%s4402_s4 + $0x238] sm:$0xff] }
 0x97e   : > { %v3020_v23 = vpop.f32.mrf.mxu0 }
 0x97f   : > { %v2382_v17 = vmax.f32 %v2378_v43, 0.0  ;;  %v2389_v36 = vadd.f32 %v2387_v34, %v2385_v14  ;;  %v2403_v43 = vld [vmem:[%s4402_s4 + $0x200] sm:$0xff]  ;;  %v2533_v34 = vld [vmem:[%s4402_s4 + $0x288] sm:$0xff] }
 0x981   : > { %v2386_v59 = vmul.f32 %v2384_v58, %v2382_v17  ;;  %v2391_v47 = vmax.f32 %v2389_v36, 0.0 }
 0x983   : > { %v2390_v12 = vadd.f32 %v2388_v63, %v2386_v59  ;;  %v2518_v63 = vld [vmem:[%s4402_s4 + $0x250] sm:$0xff]  ;;  %v2408_v59 = vld [vmem:[%s4402_s4 + $0x228] sm:$0xff] }
 0x985   : > { %v2392_v24 = vmax.f32 %v2390_v12, 0.0 }
 0x987   : > { %v2393_v0 = vpack.c.bf16 %v2392_v24, %v2391_v47 }
 0x989   : > { %3021 = vmatprep.subr.bf16.mxu0 %v2393_v0 }
 0x98a   : > { %3022 = vmatpush3.bf16.msra.mxu0 %v2393_v0  ;;  %v2516_v0 = vld [vmem:[%s4402_s4 + $0x240] sm:$0xff] }
 0x98d   : > { %3024 = vmatmul.mubr.msk.bf16.vlgmr.msra.gmra.mxu0 %vm667_vm3, %v3107_v21 }
 0x98e   : > { %3027 = vmatprep.mubr.msk.bf16.mxu0 %vm667_vm3, %v3108_v39 }
 0x995   : > { %3028 = vmatmul.mubr.msk.bf16.gmra.mxu0 %vm667_vm3, %v3109_v35  ;;  %v2406_v35 = vld [vmem:[%s4402_s4 + $0x218] sm:$0xff] }
 0xa4d   : > { %v3025_v61 = vpop.f32.mrf.mxu0 }
 0xa4e   : > { %v2485_v62 = vadd.f32 %v3025_v61, %v2404_v26  ;;  %v2534_v26 = vld [vmem:[%s4402_s4 + $0x290] sm:$0xff]  ;;  %v2531_v61 = vld [vmem:[%s4402_s4 + $0x278] sm:$0xff] }
 0xa4f   : > { %v2476_v22 = vpop.f32.mrf.mxu0 }
 0xa50   : > { %v2509_v33 = vmax.f32 %v2485_v62, 0.0  ;;  %v2477_v48 = vadd.f32 %v2476_v22, %v2402_v55 }
 0xa51   : > { %v3026_v14 = vpop.f32.mrf.mxu0 }
 0xa52   : > { %v2525_v58 = vmul.f32 %v2517_v44, %v2509_v33  ;;  %v2507_v23 = vmax.f32 %v2477_v48, 0.0  ;;  %v2488_v17 = vadd.f32 %v3026_v14, %v2405_v28  ;;  %v2409_v28 = vld [vmem:[%s4402_s4 + $0x230] sm:$0xff] }
 0xa53   : > { %v2479_v36 = vpop.f32.mrf.mxu0 }
 0xa54   : > { %v2523_v12 = vmul.f32 %v2515_v49, %v2507_v23  ;;  %v2510_v47 = vmax.f32 %v2488_v17, 0.0  ;;  %v2480_v24 = vadd.f32 %v2479_v36, %v2403_v43  ;;  %v2541_v21 = vadd.f32 %v2533_v34, %v2525_v58  ;;  %v2519_v43 = vld [vmem:[%s4402_s4 + $0x258] sm:$0xff]  ;;  %v2407_v58 = vld [vmem:[%s4402_s4 + $0x220] sm:$0xff] }
 0xa55   : > { %v3029_v39 = vpop.f32.mrf.mxu0  ;;  %v2532_v23 = vld [vmem:[%s4402_s4 + $0x280] sm:$0xff] }
 0xa56   : > { %v2526_v55 = vmul.f32 %v2518_v63, %v2510_v47  ;;  %v2508_v62 = vmax.f32 %v2480_v24, 0.0  ;;  %v2501_v44 = vadd.f32 %v3029_v39, %v2408_v59  ;;  %2559 = vperm.xlu1 %3081, %v2541_v21   ;;  %v2539_v14 = vadd.f32 %v2531_v61, %v2523_v12  ;;  %v2521_v59 = vld [vmem:[%s4402_s4 + $0x268] sm:$0xff]  ;;  %v2535_v47 = vld [vmem:[%s4402_s4 + $0x298] sm:$0xff]  ;;  %v2520_v39 = vld [vmem:[%s4402_s4 + $0x260] sm:$0xff] }
 0xa57   : > { %v2492_v22 = vpop.f32.mrf.mxu0 }
 0xa58   : > { %v2524_v33 = vmul.f32 %v2516_v0, %v2508_v62  ;;  %v2493_v48 = vadd.f32 %v2492_v22, %v2406_v35  ;;  %v2542_v49 = vadd.f32 %v2534_v26, %v2526_v55  ;;  %v2513_v17 = vmax.f32 %v2501_v44, 0.0  ;;  %v2522_v62 = vld [vmem:[%s4402_s4 + $0x270] sm:$0xff]  ;;  %v2536_v44 = vld [vmem:[%s4402_s4 + $0x2a0] sm:$0xff]  ;;  %v2537_v22 = vld [vmem:[%s4402_s4 + $0x2a8] sm:$0xff] }
 0xa59   : > { %v3030_v34 = vpop.f32.mrf.mxu0 }
 0xa5a   : > { %v2511_v63 = vmax.f32 %v2493_v48, 0.0  ;;  %v2504_v36 = vadd.f32 %v3030_v34, %v2409_v28  ;;  %2564 = vperm.xlu0 %3080, %v2542_v49   ;;  %2549 = vperm.xlu1 %3081, %v2539_v14   ;;  %v2540_v21 = vadd.f32 %v2532_v23, %v2524_v33  ;;  %v2529_v35 = vmul.f32 %v2521_v59, %v2513_v17  ;;  %v2538_v14 = vld [vmem:[%s4402_s4 + $0x2b0] sm:$0xff]  ;;  %v2006_v34 = vpop.permute.xlu1 %2005  ;;  %v2109_v59 = vpop.f32.mrf.mxu1 }
 0xa5b   : > { %v2495_v12 = vpop.f32.mrf.mxu0  ;;  %v2110_v46 = vadd.f32 %v2109_v59, %v2006_v34 }
 0xa5c   : > { %v2527_v24 = vmul.f32 %v2519_v43, %v2511_v63  ;;  %v2496_v0 = vadd.f32 %v2495_v12, %v2407_v58  ;;  %v2514_v26 = vmax.f32 %v2504_v36, 0.0  ;;  %v2545_v49 = vadd.f32 %v2537_v22, %v2529_v35  ;;  %v2011_v58 = vpop.permute.xlu0 %2010 }
 0xa5d   : > { %v2148_v7 = vmax.f32 %v2110_v46, 0.0 }
 0xa5e   : > { %v2512_v61 = vmax.f32 %v2496_v0, 0.0  ;;  %2554 = vperm.xlu0 %3080, %v2540_v21   ;;  %v2543_v55 = vadd.f32 %v2535_v47, %v2527_v24  ;;  %v2530_v33 = vmul.f32 %v2522_v62, %v2514_v26  ;;  %v2016_v23 = vpop.permute.xlu1 %2015  ;;  %v2111_v47 = vpop.f32.mrf.mxu1 }
 0xa5f   : > { %v2112_v16 = vadd.f32 %v2111_v47, %v2006_v34 }
 0xa60   : > { %v2528_v28 = vmul.f32 %v2520_v39, %v2512_v61  ;;  %2569 = vperm.xlu1 %3081, %v2543_v55   ;;  %v2546_v43 = vadd.f32 %v2538_v14, %v2530_v33  ;;  %v2021_v17 = vpop.permute.xlu0 %2020  ;;  %v2113_v21 = vpop.f32.mrf.mxu1 }
 0xa61   : > { %v2114_v54 = vadd.f32 %v2113_v21, %v2011_v58  ;;  %v2149_v6 = vmax.f32 %v2112_v16, 0.0 }
 0xa62   : > { %v2544_v48 = vadd.f32 %v2536_v44, %v2528_v28  ;;  %v2026_v63 = vpop.permute.xlu1 %2025  ;;  %v2115_v35 = vpop.f32.mrf.mxu1 }
 0xa63   : > { %v2150_v10 = vmax.f32 %v2114_v54, 0.0  ;;  %v2116_v4 = vadd.f32 %v2115_v35, %v2011_v58 }
 0xa64   : > { %2574 = vperm.xlu0 %3080, %v2544_v48   ;;  %2579 = vperm.xlu1 %3081, %v2545_v49   ;;  %v2031_v36 = vpop.permute.xlu0 %2030  ;;  %v2119_v61 = vpop.f32.mrf.mxu1 }
 0xa65   : > { %v2120_v52 = vadd.f32 %v2119_v61, %v2016_v23 }
 0xa66   : > { %v4218_v12 = vpop.permute.xlu1 %2035  ;;  %v2121_v44 = vpop.f32.mrf.mxu1 }
 0xa67   : > { %v2122_v18 = vadd.f32 %v2121_v44, %v2016_v23  ;;  %v2152_v20 = vmax.f32 %v2120_v52, 0.0 }
 0xa68   : > { %2584 = vperm.xlu0 %3080, %v2546_v43   ;;  %v4220_v24 = vpop.permute.xlu0 %2040  ;;  %v2123_v28 = vpop.f32.mrf.mxu1 }
 0xa69   : > { %v2153_v25 = vmax.f32 %v2122_v18, 0.0  ;;  %v2124_v3 = vadd.f32 %v2123_v28, %v2021_v17  ;;  %v2151_v28 = vmax.f32 %v2116_v4, 0.0 }
 0xa6a   : > { %v2175_v0 = vpop.permute.xlu1 %2174  ;;  %v2125_v48 = vpop.f32.mrf.mxu1 }
 0xa6b   : > { %v2126_v56 = vadd.f32 %v2125_v48, %v2021_v17  ;;  %v2154_v44 = vmax.f32 %v2124_v3, 0.0  ;;  %v2212_v21 = vmul.f32 %v2175_v0, %v2148_v7  ;;  %v2213_v52 = vmul.f32 %v2175_v0, %v2149_v6 }
 0xa6c   : > { %v2180_v39 = vpop.permute.xlu0 %2179  ;;  %v2129_v43 = vpop.f32.mrf.mxu1 }
 0xa6d   : > { %v2155_v60 = vmax.f32 %v2126_v56, 0.0  ;;  %v2130_v47 = vadd.f32 %v2129_v43, %v2026_v63  ;;  %v2214_v18 = vmul.f32 %v2180_v39, %v2150_v10  ;;  %v2215_v10 = vmul.f32 %v2180_v39, %v2151_v28 }
 0xa6e   : > { %v2185_v26 = vpop.permute.xlu1 %2184  ;;  %v2131_v13 = vpop.f32.mrf.mxu1 }
 0xa6f   : > { %v2216_v61 = vmul.f32 %v2185_v26, %v2152_v20  ;;  %v2217_v23 = vmul.f32 %v2185_v26, %v2153_v25  ;;  %v2132_v17 = vadd.f32 %v2131_v13, %v2026_v63  ;;  %v2156_v20 = vmax.f32 %v2130_v47, 0.0 }
 0xa70   : > { %v2190_v55 = vpop.permute.xlu0 %2189  ;;  %v2133_v53 = vpop.f32.mrf.mxu1 }
 0xa71   : > { %v2218_v48 = vmul.f32 %v2190_v55, %v2154_v44  ;;  %v2219_v46 = vmul.f32 %v2190_v55, %v2155_v60  ;;  %v2134_v25 = vadd.f32 %v2133_v53, %v2031_v36  ;;  %v2157_v4 = vmax.f32 %v2132_v17, 0.0 }
 0xa72   : > { %v4222_v62 = vpop.permute.xlu1 %2194  ;;  %v2135_v29 = vpop.f32.mrf.mxu1 }
 0xa73   : > { %v2136_v3 = vadd.f32 %v2135_v29, %v2031_v36  ;;  %v2220_v53 = vmul.f32 %v4222_v62, %v2156_v20  ;;  %v2158_v29 = vmax.f32 %v2134_v25, 0.0 }
 0xa74   : > { %v4224_v22 = vpop.permute.xlu0 %2199  ;;  %v2139_v59 = vpop.f32.mrf.mxu1 }
 0xa75   : > { %v2140_v56 = vadd.f32 %v2139_v59, %v4218_v12  ;;  %v2159_v36 = vmax.f32 %v2136_v3, 0.0 }
 0xa76   : > { %v4226_v33 = vpop.permute.xlu1 %2204  ;;  %v2141_v16 = vpop.f32.mrf.mxu1 }
 0xa77   : > { %v2142_v13 = vadd.f32 %v2141_v16, %v4218_v12  ;;  %v2160_v43 = vmax.f32 %v2140_v56, 0.0  ;;  %v2221_v12 = vmul.f32 %v4222_v62, %v2157_v4  ;;  %v2223_v28 = vmul.f32 %v4224_v22, %v2159_v36 }
 0xa78   : > { %v4228_v49 = vpop.permute.xlu0 %2209 }
 0xa79   : > { %v2161_v44 = vmax.f32 %v2142_v13, 0.0  ;;  %v2224_v16 = vmul.f32 %v4226_v33, %v2160_v43 }
 0xa7a   : > { %v2239_v14 = vpop.permute.xlu1 %2238 }
 0xa7b   : > { %v2276_v7 = vadd.f32 %v2239_v14, %v2212_v21  ;;  %v2277_v6 = vadd.f32 %v2239_v14, %v2213_v52  ;;  %v2225_v3 = vmul.f32 %v4226_v33, %v2161_v44 }
 0xa7c   : > { %v4230_v41 = vpop.permute.xlu0 %2243 }
 0xa7d   : > { %v2278_v60 = vadd.f32 %v4230_v41, %v2214_v18  ;;  %v2279_v52 = vadd.f32 %v4230_v41, %v2215_v10  ;;  %v2222_v18 = vmul.f32 %v4224_v22, %v2158_v29 }
 0xa7e   : > { %v2249_v45 = vpop.permute.xlu1 %2248 }
 0xa7f   : > { %v2280_v37 = vadd.f32 %v2249_v45, %v2216_v61  ;;  %v2281_v1 = vadd.f32 %v2249_v45, %v2217_v23 }
 0xa80   : > { %v2254_v42 = vpop.permute.xlu0 %2253 }
 0xa81   : > { %v2282_v0 = vadd.f32 %v2254_v42, %v2218_v48  ;;  %v2283_v55 = vadd.f32 %v2254_v42, %v2219_v46 }
 0xa82   : > { %v4232_v15 = vpop.permute.xlu1 %2258 }
 0xa83   : > { %v2284_v46 = vadd.f32 %v4232_v15, %v2220_v53 }
 0xa84   : > { %v4234_v30 = vpop.permute.xlu0 %2263 }
 0xa85   : > { %v2286_v10 = vadd.f32 %v4234_v30, %v2222_v18  ;;  %v2287_v33 = vadd.f32 %v4234_v30, %v2223_v28 }
 0xa86   : > { %v4236_v34 = vpop.permute.xlu1 %2268 }
 0xa87   : > { %v2288_v13 = vadd.f32 %v4236_v34, %v2224_v16 }
 0xa88   : > { %v4238_v54 = vpop.permute.xlu0 %2273 }
 0xad1   : > { %v2560_v58 = vpop.permute.xlu1 %2559 }
 0xad2   : > { %v2591_v35 = vadd.f32 %v2560_v58, %v2280_v37  ;;  %v2592_v26 = vadd.f32 %v2560_v58, %v2281_v1  ;;  %v2143_v1 = vpop.f32.mrf.mxu1  ;;  %v2285_v58 = vadd.f32 %v4232_v15, %v2221_v12 }
 0xad3   : > { %v2144_v56 = vadd.f32 %v2143_v1, %v4220_v24 }
 0xad4   : > { %v2953_v63 = vmul.f32 -1.442695, %v2591_v35  ;;  %v2954_v45 = vmul.f32 -1.442695, %v2592_v26  ;;  %v2145_v20 = vpop.f32.mrf.mxu1 }
 0xad5   : > { %v2565_v61 = vpop.permute.xlu0 %2564  ;;  %v2550_v37 = vpop.permute.xlu1 %2549 }
 0xad6   : > { %3132 = vpow2.f32 %v2953_v63  ;;  %v2593_v14 = vadd.f32 %v2565_v61, %v2282_v0  ;;  %v2594_v39 = vadd.f32 %v2565_v61, %v2283_v55  ;;  %v2587_v23 = vadd.f32 %v2550_v37, %v2276_v7 }
 0xad7   : > { %3134 = vpow2.f32 %v2954_v45  ;;  %v2588_v59 = vadd.f32 %v2550_v37, %v2277_v6  ;;  %v2146_v7 = vadd.f32 %v2145_v20, %v4220_v24  ;;  %v2289_v0 = vadd.f32 %v4236_v34, %v2225_v3 }
 0xad8   : > { %v2955_v47 = vmul.f32 -1.442695, %v2593_v14  ;;  %v2956_v21 = vmul.f32 -1.442695, %v2594_v39  ;;  %v2949_v42 = vmul.f32 -1.442695, %v2587_v23 }
 0xad9   : > { %v2950_v17 = vmul.f32 -1.442695, %v2588_v59  ;;  %v2555_v48 = vpop.permute.xlu0 %2554  ;;  %v2163_v29 = vmax.f32 %v2146_v7, 0.0 }
 0xada   : > { %3136 = vpow2.f32 %v2955_v47  ;;  %v2589_v62 = vadd.f32 %v2555_v48, %v2278_v60  ;;  %v2590_v25 = vadd.f32 %v2555_v48, %v2279_v52  ;;  %v2162_v60 = vmax.f32 %v2144_v56, 0.0 }
 0xadb   : > { %3138 = vpow2.f32 %v2956_v21  ;;  %v2570_v41 = vpop.permute.xlu1 %2569  ;;  %v2227_v23 = vmul.f32 %v4228_v49, %v2163_v29 }
 0xadc   : > { %3140 = vpow2.f32 %v2949_v42  ;;  %v2951_v22 = vmul.f32 -1.442695, %v2589_v62  ;;  %v2952_v35 = vmul.f32 -1.442695, %v2590_v25  ;;  %v2595_v26 = vadd.f32 %v2570_v41, %v2284_v46 }
 0xadd   : > { %3142 = vpow2.f32 %v2950_v17  ;;  %v2596_v6 = vadd.f32 %v2570_v41, %v2285_v58  ;;  %v2226_v1 = vmul.f32 %v4228_v49, %v2162_v60  ;;  %v2291_v28 = vadd.f32 %v4238_v54, %v2227_v23 }
 0xade   : > { %3144 = vpow2.f32 %v2951_v22  ;;  %v2957_v4 = vmul.f32 -1.442695, %v2595_v26 }
 0xadf   : > { %3146 = vpow2.f32 %v2952_v35  ;;  %v2958_v63 = vmul.f32 -1.442695, %v2596_v6  ;;  %v2575_v15 = vpop.permute.xlu0 %2574  ;;  %v2580_v45 = vpop.permute.xlu1 %2579  ;;  %v2290_v42 = vadd.f32 %v4238_v54, %v2226_v1  ;;  %v4479_v6 = vmax.f32 %v3821_v2, 0.0 }
 0xae0   : > { %3148 = vpow2.f32 %v2957_v4  ;;  %v2597_v55 = vadd.f32 %v2575_v15, %v2286_v10  ;;  %v2598_v24 = vadd.f32 %v2575_v15, %v2287_v33  ;;  %v2599_v53 = vadd.f32 %v2580_v45, %v2288_v13 }
 0xae1   : > { %3150 = vpow2.f32 %v2958_v63  ;;  %v2600_v36 = vadd.f32 %v2580_v45, %v2289_v0  ;;  %v2703_v10 = vsub.f32 %v4479_v6, %v3918_v8  ;;  %v4480_v13 = vmax.f32 %v3799_v27, 0.0 }
 0xae2   : > { %v2959_v43 = vmul.f32 -1.442695, %v2597_v55  ;;  %v2960_v61 = vmul.f32 -1.442695, %v2598_v24  ;;  %v2961_v39 = vmul.f32 -1.442695, %v2599_v53 }
 0xae3   : > { %v3133_v37 = vpop.eup %3132  ;;  %v2962_v34 = vmul.f32 -1.442695, %v2600_v36  ;;  %v2585_v59 = vpop.permute.xlu0 %2584  ;;  %v2704_v60 = vsub.f32 %v4480_v13, %v3883_v50  ;;  %v4481_v2 = vmax.f32 %v3922_v31, 0.0 }
 0xae4   : > { %v3135_v30 = vpop.eup %3134  ;;  %v2655_v14 = vadd.f32 1.0, %v3133_v37  ;;  %3152 = vpow2.f32 %v2959_v43  ;;  %v2601_v48 = vadd.f32 %v2585_v59, %v2290_v42  ;;  %v2602_v20 = vadd.f32 %v2585_v59, %v2291_v28 }
 0xae5   : > { %v2656_v12 = vadd.f32 1.0, %v3135_v30  ;;  %3154 = vpow2.f32 %v2960_v61  ;;  %v2705_v53 = vsub.f32 %v4481_v2, %v3961_v38  ;;  %v4482_v43 = vmax.f32 %v3841_v5, 0.0  ;;  %v4498_v2 = vld [vmem:[#allocation7_spill] sm:$0xff] }
 0xae6   : > { %3156 = vrcp.f32 %v2655_v14  ;;  %v2963_v22 = vmul.f32 -1.442695, %v2601_v48  ;;  %v2964_v35 = vmul.f32 -1.442695, %v2602_v20  ;;  %v4483_v14 = vmax.f32 %v3787_v40, 0.0  ;;  %v4489_v48 = vld [vmem:[#allocation11_spill] sm:$0xff] }
 0xae7   : > { %v3137_v44 = vpop.eup %3136  ;;  %3158 = vrcp.f32 %v2656_v12  ;;  %v2706_v61 = vsub.f32 %v4482_v43, %v3937_v9 }
 0xae8   : > { %v3139_v47 = vpop.eup %3138  ;;  %v2657_v21 = vadd.f32 1.0, %v3137_v44  ;;  %3160 = vpow2.f32 %v2961_v39  ;;  %v2699_v39 = vsub.f32 %v4483_v14, %v3946_v32 }
 0xae9   : > { %v3141_v52 = vpop.eup %3140  ;;  %v2658_v18 = vadd.f32 1.0, %v3139_v47  ;;  %3162 = vpow2.f32 %v2962_v34 }
 0xaea   : > { %v3143_v17 = vpop.eup %3142  ;;  %3164 = vrcp.f32 %v2657_v21  ;;  %v2651_v49 = vadd.f32 1.0, %v3141_v52  ;;  %v4486_v52 = vld [vmem:[#allocation22_spill] sm:$0xff] }
 0xaeb   : > { %v3145_v46 = vpop.eup %3144  ;;  %3166 = vrcp.f32 %v2658_v18  ;;  %v2652_v16 = vadd.f32 1.0, %v3143_v17 }
 0xaec   : > { %v3147_v62 = vpop.eup %3146  ;;  %3168 = vrcp.f32 %v2651_v49  ;;  %v2653_v25 = vadd.f32 1.0, %v3145_v46  ;;  %v4490_v46 = vld [vmem:[#allocation8_spill] sm:$0xff] }
 0xaed   : > { %v3149_v3 = vpop.eup %3148  ;;  %3170 = vrcp.f32 %v2652_v16  ;;  %v2654_v56 = vadd.f32 1.0, %v3147_v62  ;;  %v4491_v16 = vmax.f32 %v4490_v46, 0.0  ;;  %v4508_v46 = vld [vmem:[#allocation16_spill] sm:$0xff] }
 0xaee   : > { %v3151_v41 = vpop.eup %3150  ;;  %3172 = vrcp.f32 %v2653_v25  ;;  %v2659_v58 = vadd.f32 1.0, %v3149_v3 }
 0xaef   : > { %3174 = vrcp.f32 %v2654_v56  ;;  %v2660_v54 = vadd.f32 1.0, %v3151_v41  ;;  %v2707_v20 = vsub.f32 %v4491_v16, %v4489_v48  ;;  %v4492_v56 = vld [vmem:[#allocation12_spill] sm:$0xff]  ;;  %v4493_v41 = vld [vmem:[#allocation9_spill] sm:$0xff]  ;;  %v4509_v16 = vmax.f32 %v4508_v46, 0.0 }
 0xaf0   : > { %3176 = vrcp.f32 %v2659_v58  ;;  %v4494_v58 = vmax.f32 %v4493_v41, 0.0 }
 0xaf1   : > { %v3153_v26 = vpop.eup %3152  ;;  %3178 = vrcp.f32 %v2660_v54 }
 0xaf2   : > { %v3155_v7 = vpop.eup %3154  ;;  %v2661_v4 = vadd.f32 1.0, %v3153_v26  ;;  %3180 = vpow2.f32 %v2963_v22  ;;  %v2708_v22 = vsub.f32 %v4494_v58, %v4492_v56 }
 0xaf3   : > { %v3157_v33 = vpop.eup %3156  ;;  %v2662_v63 = vadd.f32 1.0, %v3155_v7  ;;  %3182 = vpow2.f32 %v2964_v35 }
 0xaf4   : > { %v3159_v15 = vpop.eup %3158  ;;  %v2719_v45 = vmul.f32 %v3157_v33, %v2703_v10  ;;  %3184 = vrcp.f32 %v2661_v4 }
 0xaf5   : > { %v3161_v0 = vpop.eup %3160  ;;  %v2720_v55 = vmul.f32 %v3159_v15, %v2704_v60  ;;  %3186 = vrcp.f32 %v2662_v63  ;;  %v4495_v63 = vld [vmem:[#allocation21_spill] sm:$0xff] }
 0xaf6   : > { %v3163_v24 = vpop.eup %3162  ;;  %v2735_v29 = vadd.f32 %v2719_v45, %v3918_v8  ;;  %v2663_v36 = vadd.f32 1.0, %v3161_v0  ;;  %v4484_v8 = vmax.f32 %v3791_v19, 0.0  ;;  %v4487_v19 = vld [vmem:[#allocation10_spill] sm:$0xff]  ;;  %v4496_v15 = vld [vmem:[#allocation5_spill] sm:$0xff] }
 0xaf7   : > { %v3165_v27 = vpop.eup %3164  ;;  %v2736_v37 = vadd.f32 %v2720_v55, %v3883_v50  ;;  %v2664_v30 = vadd.f32 1.0, %v3163_v24  ;;  %v4485_v50 = vmax.f32 %v3950_v11, 0.0  ;;  %v4488_v18 = vmax.f32 %v4487_v19, 0.0 }
 0xaf8   : > { %v3167_v1 = vpop.eup %3166  ;;  %v2751_v23 = vmul.f32 2.0, %v2735_v29  ;;  %v2721_v12 = vmul.f32 %v3165_v27, %v2705_v53  ;;  %3188 = vrcp.f32 %v2663_v36  ;;  %v2700_v34 = vsub.f32 %v4484_v8, %v3912_v51  ;;  %v4499_v53 = vld [vmem:[#allocation15_spill] sm:$0xff] }
 0xaf9   : > { %v3169_v31 = vpop.eup %3168  ;;  %v2752_v44 = vmul.f32 2.0, %v2736_v37  ;;  %v2722_v59 = vmul.f32 %v3167_v1, %v2706_v61  ;;  %3190 = vrcp.f32 %v2664_v30  ;;  %v2701_v47 = vsub.f32 %v4485_v50, %v3977_v57 }
 0xafa   : > { %v3171_v5 = vpop.eup %3170  ;;  %2767 = vst [vmem:[%s4288_s6 + $0x20] sm:$0xff] %v2751_v23  ;;  %v2737_v40 = vadd.f32 %v2721_v12, %v3961_v38  ;;  %v2715_v21 = vmul.f32 %v3169_v31, %v2699_v39  ;;  %v2702_v28 = vsub.f32 %v4488_v18, %v4486_v52  ;;  %v4497_v45 = vmax.f32 %v4496_v15, 0.0  ;;  %v4501_v23 = vld [vmem:[#allocation6_spill] sm:$0xff]  ;;  %v4502_v12 = vld [vmem:[#allocation13_spill] sm:$0xff] }
 0xafb   : > { %v3173_v42 = vpop.eup %3172  ;;  %2768 = vst [vmem:[%s4288_s6 + $0x28] sm:$0xff] %v2752_v44  ;;  %v2738_v17 = vadd.f32 %v2722_v59, %v3937_v9  ;;  %v2716_v49 = vmul.f32 %v3171_v5, %v2700_v34  ;;  %v4500_v29 = vmax.f32 %v4499_v53, 0.0  ;;  %v4503_v31 = vmax.f32 %v4502_v12, 0.0  ;;  %v4504_v59 = vld [vmem:[#allocation18_spill] sm:$0xff] }
 0xafc   : > { %v3175_v11 = vpop.eup %3174  ;;  %v2753_v62 = vmul.f32 2.0, %v2737_v40  ;;  %v2731_v38 = vadd.f32 %v2715_v21, %v3946_v32  ;;  %v2717_v25 = vmul.f32 %v3173_v42, %v2701_v47  ;;  %v4505_v5 = vld [vmem:[#allocation14_spill] sm:$0xff] }
 0xafd   : > { %v3177_v3 = vpop.eup %3176  ;;  %v2754_v54 = vmul.f32 2.0, %v2738_v17  ;;  %v2732_v9 = vadd.f32 %v2716_v49, %v3912_v51  ;;  %v2718_v35 = vmul.f32 %v3175_v11, %v2702_v28  ;;  %v2709_v51 = vsub.f32 %v4497_v45, %v4495_v63 }
 0xafe   : > { %v3179_v26 = vpop.eup %3178  ;;  %2769 = vst [vmem:[%s4288_s6 + $0x30] sm:$0xff] %v2753_v62  ;;  %v2747_v7 = vmul.f32 2.0, %v2731_v38  ;;  %v2733_v6 = vadd.f32 %v2717_v25, %v3977_v57  ;;  %v2723_v10 = vmul.f32 %v3177_v3, %v2707_v20  ;;  %v2710_v36 = vsub.f32 %v4500_v29, %v4498_v2  ;;  %v4510_v38 = vld [vmem:[#allocation20_spill] sm:$0xff]  ;;  %v4511_v25 = vld [vmem:[#allocation17_spill] sm:$0xff] }
 0xaff   : > { %v3181_v4 = vpop.eup %3180  ;;  %2770 = vst [vmem:[%s4288_s6 + $0x38] sm:$0xff] %v2754_v54  ;;  %v2748_v32 = vmul.f32 2.0, %v2732_v9  ;;  %v2734_v33 = vadd.f32 %v2718_v35, %v4486_v52  ;;  %v2724_v13 = vmul.f32 %v3179_v26, %v2708_v22  ;;  %v2711_v8 = vsub.f32 %v4503_v31, %v4501_v23 }
 0xb00   : > { %v3183_v60 = vpop.eup %3182  ;;  %2763 = vst [vmem:[%s4288_s6] sm:$0xff] %v2747_v7  ;;  %v2749_v0 = vmul.f32 2.0, %v2733_v6  ;;  %v2739_v55 = vadd.f32 %v2723_v10, %v4489_v48  ;;  %v2665_v24 = vadd.f32 1.0, %v3181_v4  ;;  %v4506_v50 = vmax.f32 %v4505_v5, 0.0  ;;  %v4507_v48 = vld [vmem:[#allocation19_spill] sm:$0xff] }
 0xb01   : > { %v3185_v57 = vpop.eup %3184  ;;  %2764 = vst [vmem:[%s4288_s6 + $0x8] sm:$0xff] %v2748_v32  ;;  %v2750_v27 = vmul.f32 2.0, %v2734_v33  ;;  %v2740_v43 = vadd.f32 %v2724_v13, %v4492_v56  ;;  %v2666_v61 = vadd.f32 1.0, %v3183_v60  ;;  %v2713_v20 = vsub.f32 %v4509_v16, %v4507_v48 }
 0xb02   : > { %v3187_v37 = vpop.eup %3186  ;;  %2765 = vst [vmem:[%s4288_s6 + $0x10] sm:$0xff] %v2749_v0  ;;  %v2755_v30 = vmul.f32 2.0, %v2739_v55  ;;  %v2725_v1 = vmul.f32 %v3185_v57, %v2709_v51  ;;  %3192 = vrcp.f32 %v2665_v24  ;;  %v2712_v47 = vsub.f32 %v4506_v50, %v4504_v59 }
 0xb03   : > { %2766 = vst [vmem:[%s4288_s6 + $0x18] sm:$0xff] %v2750_v27  ;;  %v2756_v14 = vmul.f32 2.0, %v2740_v43  ;;  %v2726_v39 = vmul.f32 %v3187_v37, %v2710_v36  ;;  %3194 = vrcp.f32 %v2666_v61  ;;  %v4512_v3 = vmax.f32 %v4511_v25, 0.0 }
 0xb04   : > { %2771 = vst [vmem:[%s4288_s6 + $0x40] sm:$0xff] %v2755_v30  ;;  %v2741_v34 = vadd.f32 %v2725_v1, %v4495_v63 }
 0xb05   : > { %v3189_v44 = vpop.eup %3188  ;;  %2772 = vst [vmem:[%s4288_s6 + $0x48] sm:$0xff] %v2756_v14  ;;  %v2742_v40 = vadd.f32 %v2726_v39, %v4498_v2  ;;  %v2714_v56 = vsub.f32 %v4512_v3, %v4510_v38 }
 0xb06   : > { %v3191_v21 = vpop.eup %3190  ;;  %v2757_v42 = vmul.f32 2.0, %v2741_v34  ;;  %v2727_v52 = vmul.f32 %v3189_v44, %v2711_v8 }
 0xb07   : > { %v2758_v19 = vmul.f32 2.0, %v2742_v40  ;;  %v2728_v18 = vmul.f32 %v3191_v21, %v2712_v47 }
 0xb08   : > { %2773 = vst [vmem:[%s4288_s6 + $0x50] sm:$0xff] %v2757_v42  ;;  %v2743_v28 = vadd.f32 %v2727_v52, %v4501_v23 }
 0xb09   : > { %2774 = vst [vmem:[%s4288_s6 + $0x58] sm:$0xff] %v2758_v19  ;;  %v2744_v17 = vadd.f32 %v2728_v18, %v4504_v59 }
 0xb0a   : > { %v2759_v49 = vmul.f32 2.0, %v2743_v28 }
 0xb0b   : > { %v2760_v11 = vmul.f32 2.0, %v2744_v17 }
 0xb0c   : > { %2775 = vst [vmem:[%s4288_s6 + $0x60] sm:$0xff] %v2759_v49 }
 0xb0d   : > { %2776 = vst [vmem:[%s4288_s6 + $0x68] sm:$0xff] %v2760_v11 }
 0xb0f   : > { %v3193_v62 = vpop.eup %3192 }
 0xb10   : > { %v3195_v41 = vpop.eup %3194  ;;  %v2729_v58 = vmul.f32 %v3193_v62, %v2713_v20 }
 0xb11   : > { %v2730_v22 = vmul.f32 %v3195_v41, %v2714_v56 }
 0xb12   : > { %v2745_v54 = vadd.f32 %v2729_v58, %v4507_v48 }
 0xb13   : > { %v2746_v9 = vadd.f32 %v2730_v22, %v4510_v38 }
 0xb14   : > { %v2761_v35 = vmul.f32 2.0, %v2745_v54 }
 0xb15   : > { %v2762_v26 = vmul.f32 2.0, %v2746_v9 }
 0xb16   : > { %2777 = vst [vmem:[%s4288_s6 + $0x70] sm:$0xff] %v2761_v35 }
 0xb17   : > { %2778 = vst [vmem:[%s4288_s6 + $0x78] sm:$0xff] %v2762_v26 }
 0xb18   : > { %3209 = shalt.err (!%p3206_p3)
}
 0xb19   : > { %s3210_s17 = scalar_lea.hbm %s4350_s12, 2048  ;;  %s3214_s8 = scalar_lea.hbm %s4403_s5, 4096 }
 0xb1a   : > { %p3211_p4 = scmp.ne.s32.totalorder %s4350_s12, %s3210_s17  ;;  %p3215_p9 = scmp.lt.s32.totalorder %s4350_s12, %s4403_s5 }
 0xb1b   : > { %p3216_p10 = scmp.lt.s32.totalorder %s3214_s8, %s3210_s17 }
 0xb1c   : > { %p3212_p7 = pnand %p3211_p4, %p3333_p5 }
 0xb1d   : > { %p3217_p11 = por %p3216_p10, %p3215_p9 }
 0xb1e   : > { %p3213_p8 = pneg %p3212_p7 }
 0xb20   : > { %p3218_p12 = pnand %p3217_p11, %p3213_p8 }
 0xb22   : > { %3221 = shalt.err (!%p3218_p12)
}
 0xb23   : > { %s3263_s6 = smov 256   ;;  %s3264_s7 = smov 16  }
 0xb24   : > { %3031 = dma.vmem_to_hbm [thread:$0]  (%p3333_p5), %s4352_s9, 2048, %s4350_s12, %s4358_s22, %s3263_s6, %s3263_s6, %s3264_s7  }
 0xb25 PF: > { %p3037_p13 = scmp.ge.s32.totalorder %s3256_s21, 2  ;;  %s2808_s10 = sand.u32 1, %s3244_s18  }
 0xb26   : > { %s2809_s11 = scalar_lea.sflag [#allocation3], %s2808_s10 }
 0xb27   : > { %p3034_p0 = pnand %p3037_p13, %p3337_p6 }
 0xb29   : > { %p3035_p1 = pneg %p3034_p0 }
 0xb2b   : > { %3239 = dma.done.wait (%p3035_p1), %s2809_s11, 2048  }
 0xb2c   : > { %3241 = vsyncadd (%p3035_p1), %s2809_s11, 4294965248  ;;  %p15_p2 = scmp.ge.s32.totalorder %s3320_s24, 4   ;;  %s4513_s18 = smov %s3248_s19 }
 0xb2d   : > { %s4514_s19 = smov %s3252_s20  ;;  %s4515_s20 = smov %s3331_s27 }
 0xb2e   : > { %s4516_s21 = smov %s3320_s24  ;;  %17 = sbr.rel (!%p15_p2) target bundleno = 3 (0x3), region = 78 }
 0xb33   :  { %2814 = vsyncpa [#allocation3], 1 }
 0xb34   :  { %2816 = vsyncpa [#allocation3 + $0x1], 1 }

</bundles_post_ra>
